<compile_context>
chip_gen: v7x
topology: tpu7x:2x2x1
jax: 0.10.0
libtpu: 0.0.40
codegen_flags: <defaults>
</compile_context>

<pallas_src>
import math

import jax
import jax.numpy as jnp
import numpy as np
from jax.experimental import pallas as pl
from jax.experimental.pallas import tpu as pltpu

D_MODEL = 32
NHEAD = 4
HEAD_DIM = D_MODEL // NHEAD
LN_EPS = 1e-5


def _layernorm_cols(x, gamma_col, beta_col):
    """LayerNorm over the feature (sublane) axis of a (D, M) slab."""
    mu = jnp.mean(x, axis=0, keepdims=True)
    xc = x - mu
    var = jnp.mean(xc * xc, axis=0, keepdims=True)
    inv = jax.lax.rsqrt(var + LN_EPS)
    return xc * inv * gamma_col + beta_col


def encoder_layer_kernel(
    x_ref,        # (D, TB*L)   transposed src slab (lane-dense)
    wqkv_ref,     # (3D, D)     fused [Wq^T*scale ; Wk^T ; Wv^T]
    bqkv_ref,     # (3D, 1)     fused bias column
    wstack_ref,   # (3, D, D)   [Wo^T, W1^T, W2^T]
    vstack_ref,   # (D, 8)      columns: bo,b1,b2,ln1_g,ln1_b,ln2_g,ln2_b,pad
    out_ref,      # (D, TB*L)
    attn_ref,     # (L, TB*L)   head-averaged probs, relative key offset layout
):
    D, M = x_ref.shape
    L = attn_ref.shape[0]
    NH, DH = NHEAD, HEAD_DIM

    x = x_ref[...]                                      # (D, M)

    vstack = vstack_ref[...]                            # (D, 8) parameter columns
    bo, b1, b2 = vstack[:, 0:1], vstack[:, 1:2], vstack[:, 2:3]
    g1, be1 = vstack[:, 3:4], vstack[:, 4:5]
    g2, be2 = vstack[:, 5:6], vstack[:, 6:7]

    # ---- fused QKV projection: one MXU matmul (96,32) @ (32,M) ----
    qkv = jnp.dot(wqkv_ref[...], x, preferred_element_type=jnp.float32) + bqkv_ref[...]
    qm = qkv[0:D, :]                                    # scaled Q   (D, M)
    kv = qkv[D:, :]                                     # [K ; V]    (2D, M)

    # lane position within each length-L token group (the sequence position q)
    pos = jax.lax.broadcasted_iota(jnp.int32, (1, M), 1) % L

    def group_shift(arr, delta):
        """out[:, b*L + i] = arr[:, b*L + (i + delta) % L]  (per-batch circular shift).

        Built only from static slices + concatenate + select so it is purely
        VPU/vector-copy work (no MXU, no primitive-direction ambiguity)."""
        fwd = jnp.concatenate([arr[:, delta:], arr[:, :delta]], axis=1)       # arr[c+delta]
        s = L - delta
        back = jnp.concatenate([arr[:, M - s:], arr[:, :M - s]], axis=1)      # arr[c+delta-L]
        return jnp.where(pos < s, fwd, back)

    # ---- attention scores for every relative key offset (VPU/XLU only) ----
    s_list, v_list = [], []
    for delta in range(L):                              # static unroll, L = 8
        kv_d = kv if delta == 0 else group_shift(kv, delta)
        k_d = kv_d[:D, :]
        v_list.append(kv_d[D:, :])
        per_head = [
            jnp.sum(qm[h * DH:(h + 1) * DH, :] * k_d[h * DH:(h + 1) * DH, :],
                    axis=0, keepdims=True)              # (1, M)
            for h in range(NH)
        ]
        s_list.append(jnp.concatenate(per_head, axis=0))  # (NH, M)

    # ---- softmax over the L relative offsets (exact division) ----
    m = s_list[0]
    for s in s_list[1:]:
        m = jnp.maximum(m, s)
    e_list = [jnp.exp(s - m) for s in s_list]
    denom = e_list[0]
    for e in e_list[1:]:
        denom = denom + e
    inv = 1.0 / denom                                   # exact: rows sum to 1
    p_list = [e * inv for e in e_list]                  # each (NH, M)

    # head-averaged attention probabilities (relative-offset layout, lane-dense)
    attn_ref[...] = jnp.concatenate(
        [jnp.sum(p, axis=0, keepdims=True) for p in p_list], axis=0) * (1.0 / NH)

    # ---- context: sum_delta p_delta * V_delta, accumulated per head (VPU) ----
    ctx_heads = []
    for h in range(NH):
        acc = None
        for delta in range(L):
            term = p_list[delta][h:h + 1, :] * v_list[delta][h * DH:(h + 1) * DH, :]
            acc = term if acc is None else acc + term
        ctx_heads.append(acc)                           # (DH, M)
    ctx = jnp.concatenate(ctx_heads, axis=0)            # (D, M), head-major rows

    # ---- out-projection (single matmul) + residual + LayerNorm1 ----
    wo_t, w1_t, w2_t = wstack_ref[0], wstack_ref[1], wstack_ref[2]
    attn_out = jnp.dot(wo_t, ctx, preferred_element_type=jnp.float32) + bo
    x1 = _layernorm_cols(x + attn_out, g1, be1)         # dropout = identity (eval)

    # ---- FFN + residual + LayerNorm2 ----
    h1 = jnp.maximum(jnp.dot(w1_t, x1, preferred_element_type=jnp.float32) + b1, 0.0)
    ff = jnp.dot(w2_t, h1, preferred_element_type=jnp.float32) + b2
    out_ref[...] = _layernorm_cols(x1 + ff, g2, be2)


def pack_params(params):
    """Fuse / transpose parameters into the 4 column-oriented refs the kernel uses."""
    D = D_MODEL
    scale = 1.0 / math.sqrt(HEAD_DIM)
    wqkv_t = jnp.concatenate(
        [(params["wq"] * scale).T, params["wk"].T, params["wv"].T], axis=0)    # (3D, D)
    bqkv_col = jnp.concatenate(
        [params["bq"] * scale, params["bk"], params["bv"]], axis=1).T          # (3D, 1)
    w_stack = jnp.stack(
        [params["wo"].T, params["w1"].T, params["w2"].T], axis=0)              # (3, D, D)
    vec_stack = jnp.concatenate(
        [params["bo"], params["b1"], params["b2"],
         params["ln1_g"], params["ln1_b"],
         params["ln2_g"], params["ln2_b"],
         jnp.zeros((1, D), jnp.float32)], axis=0).T                            # (D, 8)
    return wqkv_t, bqkv_col, w_stack, vec_stack


def _round_up(x, m):
    return ((x + m - 1) // m) * m


def custom_transformer_encoder_layer(src, packed, tile_b=256):
    """src: (B, L, D) f32 -> (out (B, L, D), attn_weights (B, L, L))."""
    wqkv_t, bqkv_col, w_stack, vec_stack = packed
    B, L, D = src.shape
    assert D == D_MODEL

    # Batch tile: multiple of 16 so the lane axis (TB*L) is a multiple of 128.
    TB = min(_round_up(tile_b, 16), _round_up(B, 16))
    # Keep >= 2 grid tiles when the batch allows it (v7x megacore sharding).
    if pl.cdiv(B, TB) < 2 and B >= 32:
        TB = _round_up(pl.cdiv(B, 2), 16)
    n_tiles = pl.cdiv(B, TB)
    Bp = n_tiles * TB
    if Bp != B:
        src = jnp.pad(src, ((0, Bp - B), (0, 0), (0, 0)))  # padded rows are benign

    # lane-dense transposed layout: (D, Bp*L), column = b*L + q (layout plumbing)
    x_t = jnp.transpose(src, (2, 0, 1)).reshape(D, Bp * L)

    M_blk = TB * L
    tokens = Bp * L
    flops = tokens * (2 * D * (3 * D) + 3 * (2 * D * D)) \
        + Bp * NHEAD * (2 * 2 * L * L * HEAD_DIM)
    transcendentals = Bp * NHEAD * L * L + 2 * tokens
    bytes_accessed = 4 * (2 * tokens * D + L * tokens) \
        + 4 * (6 * D * D + 3 * D + 8 * D)

    grid_spec = pltpu.PrefetchScalarGridSpec(
        num_scalar_prefetch=0,
        grid=(n_tiles,),
        in_specs=[
            pl.BlockSpec((D, M_blk), lambda i: (0, i)),        # src slab (lane-dense)
            pl.BlockSpec((3 * D, D), lambda i: (0, 0)),        # fused Wqkv^T
            pl.BlockSpec((3 * D, 1), lambda i: (0, 0)),        # fused bqkv column
            pl.BlockSpec((3, D, D), lambda i: (0, 0, 0)),      # Wo^T / W1^T / W2^T
            pl.BlockSpec((D, 8), lambda i: (0, 0)),            # bias / LN columns
        ],
        out_specs=[
            pl.BlockSpec((D, M_blk), lambda i: (0, i)),        # out slab
            pl.BlockSpec((L, M_blk), lambda i: (0, i)),        # attn (relative offsets)
        ],
    )

    out_shapes = (
        jax.ShapeDtypeStruct((D, Bp * L), jnp.float32),
        jax.ShapeDtypeStruct((L, Bp * L), jnp.float32),
    )

    fn = pl.pallas_call(
        encoder_layer_kernel,
        out_shape=out_shapes,
        grid_spec=grid_spec,
        compiler_params=pltpu.CompilerParams(
            dimension_semantics=("parallel",),           # shard batch tiles over TCs
            vmem_limit_bytes=32 * 1024 * 1024,           # v5e default is only 16 MiB
        ),
        cost_estimate=pl.CostEstimate(
            flops=flops,
            transcendentals=transcendentals,
            bytes_accessed=bytes_accessed,
        ),
    )

    out_t, attn_rel = fn(x_t, wqkv_t, bqkv_col, w_stack, vec_stack)

    # back to batch-first layouts (layout plumbing in XLA)
    out = jnp.transpose(out_t.reshape(D, Bp, L), (1, 2, 0))[:B]

    # relative offset -> absolute key position: attn[b, q, k] = rel[b, q, (k-q) % L]
    rel = jnp.transpose(attn_rel.reshape(L, Bp, L), (1, 2, 0))      # (Bp, q, delta)
    gather = (jnp.arange(L)[None, :] - jnp.arange(L)[:, None]) % L  # (q, k) -> delta
    attn = jnp.take_along_axis(
        rel, jnp.broadcast_to(gather[None], (Bp, L, L)), axis=2)[:B]
    return out, attn


def init_params(key, d_model=D_MODEL):
    """Deterministic synthetic parameters (shapes match the PyTorch module).

    Weights are stored (in, out) so the reference computes x @ W + b,
    equivalent to PyTorch's x @ W_pt.T + b; pack_params transposes them for
    the kernel's column-oriented (out, in) matmuls.
    """
    keys = jax.random.split(key, 16)
    D = d_model
    scale = 1.0 / math.sqrt(D)

    def w(k):
        return jax.random.normal(k, (D, D), jnp.float32) * scale

    def b(k):
        return jax.random.normal(k, (1, D), jnp.float32) * 0.1

    return {
        "wq": w(keys[0]), "wk": w(keys[1]), "wv": w(keys[2]),
        "bq": b(keys[3]), "bk": b(keys[4]), "bv": b(keys[5]),
        "wo": w(keys[6]), "bo": b(keys[7]),
        "w1": w(keys[8]), "b1": b(keys[9]),
        "w2": w(keys[10]), "b2": b(keys[11]),
        "ln1_g": jnp.ones((1, D), jnp.float32),
        "ln1_b": jnp.zeros((1, D), jnp.float32),
        "ln2_g": jnp.ones((1, D), jnp.float32),
        "ln2_b": jnp.zeros((1, D), jnp.float32),
    }


def _layernorm_ref(x, gamma, beta):
    mu = jnp.mean(x, axis=-1, keepdims=True)
    xc = x - mu
    var = jnp.mean(xc * xc, axis=-1, keepdims=True)
    return xc * jax.lax.rsqrt(var + LN_EPS) * gamma + beta


def reference_forward(src, params):
    """Pure-JAX reference matching the PyTorch eval-mode forward."""
    B, L, D = src.shape
    scale = 1.0 / math.sqrt(HEAD_DIM)
    q = src @ params["wq"] + params["bq"]
    k = src @ params["wk"] + params["bk"]
    v = src @ params["wv"] + params["bv"]

    def heads(t):
        return t.reshape(B, L, NHEAD, HEAD_DIM).transpose(0, 2, 1, 3)

    qh, kh, vh = heads(q), heads(k), heads(v)
    s = jnp.einsum('bhqd,bhkd->bhqk', qh, kh) * scale
    p = jax.nn.softmax(s, axis=-1)
    ctx = jnp.einsum('bhqk,bhkd->bhqd', p, vh)
    ctx = ctx.transpose(0, 2, 1, 3).reshape(B, L, D)
    attn_out = ctx @ params["wo"] + params["bo"]
    x1 = _layernorm_ref(src + attn_out, params["ln1_g"], params["ln1_b"])
    h1 = jnp.maximum(x1 @ params["w1"] + params["b1"], 0.0)
    ff = h1 @ params["w2"] + params["b2"]
    out = _layernorm_ref(x1 + ff, params["ln2_g"], params["ln2_b"])
    return out, jnp.mean(p, axis=1)


def _check(src, params, packed, tile_b):
    out, attn = custom_transformer_encoder_layer(src, packed, tile_b=tile_b)
    jax.block_until_ready(out)
    jax.block_until_ready(attn)

    B, L, D = src.shape
    assert out.shape == (B, L, D)
    assert attn.shape == (B, L, L)

    # attention rows must sum to 1 (exact softmax division now)
    row_sums = np.asarray(jnp.sum(attn, axis=-1))
    assert np.allclose(row_sums, 1.0, atol=1e-5), row_sums

    ref_out, ref_attn = reference_forward(src, params)
    assert np.allclose(np.asarray(out), np.asarray(ref_out), atol=2e-3, rtol=2e-3), \
        float(np.max(np.abs(np.asarray(out) - np.asarray(ref_out))))
    assert np.allclose(np.asarray(attn), np.asarray(ref_attn), atol=2e-3, rtol=2e-3), \
        float(np.max(np.abs(np.asarray(attn) - np.asarray(ref_attn))))
    return out, attn


if __name__ == "__main__":
    key = jax.random.PRNGKey(0)
    k_src, k_src2, k_par = jax.random.split(key, 3)

    L = 8
    params = init_params(k_par)
    packed = pack_params(params)

    # small shape consistent with the module: batch=2, seq=8, d_model=32
    src = jax.random.normal(k_src, (2, L, D_MODEL), jnp.float32)
    _check(src, params, packed, tile_b=256)

    # also exercise multiple grid tiles + batch padding (3 tiles of TB=16)
    src2 = jax.random.normal(k_src2, (40, L, D_MODEL), jnp.float32)
    _check(src2, params, packed, tile_b=16)

    # TODO(synk): src_key_padding_mask is not supported (the common call path
    # passes None); add a mask input + additive -inf score bias if ever needed.
    print("KERNEL_OK")
</pallas_src>

<mosaic_0001>
module attributes {stable_mosaic.version = 11 : i64} {
  func.func @encoder_layer_kernel(%arg0: i32, %arg1: memref<32x128xf32, #tpu.memory_space<vmem>>, %arg2: memref<96x32xf32, #tpu.memory_space<vmem>>, %arg3: memref<96x1xf32, #tpu.memory_space<vmem>>, %arg4: memref<3x32x32xf32, #tpu.memory_space<vmem>>, %arg5: memref<32x8xf32, #tpu.memory_space<vmem>>, %arg6: memref<32x128xf32, #tpu.memory_space<vmem>>, %arg7: memref<8x128xf32, #tpu.memory_space<vmem>>) attributes {dimension_semantics = [#tpu.dimension_semantics<parallel>], iteration_bounds = array<i64: 1>, scalar_prefetch = 0 : i64, scratch_operands = 0 : i64, tpu.core_type = #tpu.core_type<tc>, window_params = [{transform_indices = @transform_0, window_bounds = array<i64: 32, 128>}, {pipeline_mode = #tpu.pipeline_mode<synchronous>, transform_indices = @transform_1, window_bounds = array<i64: 96, 32>}, {pipeline_mode = #tpu.pipeline_mode<synchronous>, transform_indices = @transform_2, window_bounds = array<i64: 96, 1>}, {pipeline_mode = #tpu.pipeline_mode<synchronous>, transform_indices = @transform_3, window_bounds = array<i64: 3, 32, 32>}, {pipeline_mode = #tpu.pipeline_mode<synchronous>, transform_indices = @transform_4, window_bounds = array<i64: 32, 8>}, {transform_indices = @transform_5, window_bounds = array<i64: 32, 128>}, {transform_indices = @transform_6, window_bounds = array<i64: 8, 128>}]} {
    %c0 = arith.constant 0 : index
    %c0_0 = arith.constant 0 : index
    %0 = vector.load %arg1[%c0, %c0_0] : memref<32x128xf32, #tpu.memory_space<vmem>>, vector<32x128xf32>
    %c0_1 = arith.constant 0 : index
    %c0_2 = arith.constant 0 : index
    %1 = vector.load %arg5[%c0_1, %c0_2] : memref<32x8xf32, #tpu.memory_space<vmem>>, vector<32x8xf32>
    %2 = vector.extract_strided_slice %1 {offsets = [0, 0], sizes = [32, 1], strides = [1, 1]} : vector<32x8xf32> to vector<32x1xf32>
    %3 = vector.extract_strided_slice %1 {offsets = [0, 1], sizes = [32, 1], strides = [1, 1]} : vector<32x8xf32> to vector<32x1xf32>
    %4 = vector.extract_strided_slice %1 {offsets = [0, 2], sizes = [32, 1], strides = [1, 1]} : vector<32x8xf32> to vector<32x1xf32>
    %5 = vector.extract_strided_slice %1 {offsets = [0, 3], sizes = [32, 1], strides = [1, 1]} : vector<32x8xf32> to vector<32x1xf32>
    %6 = vector.extract_strided_slice %1 {offsets = [0, 4], sizes = [32, 1], strides = [1, 1]} : vector<32x8xf32> to vector<32x1xf32>
    %7 = vector.extract_strided_slice %1 {offsets = [0, 5], sizes = [32, 1], strides = [1, 1]} : vector<32x8xf32> to vector<32x1xf32>
    %8 = vector.extract_strided_slice %1 {offsets = [0, 6], sizes = [32, 1], strides = [1, 1]} : vector<32x8xf32> to vector<32x1xf32>
    %c0_3 = arith.constant 0 : index
    %c0_4 = arith.constant 0 : index
    %9 = vector.load %arg2[%c0_3, %c0_4] : memref<96x32xf32, #tpu.memory_space<vmem>>, vector<96x32xf32>
    %cst = arith.constant dense<0.000000e+00> : vector<96x128xf32>
    %10 = tpu.matmul %9, %0, %cst {dimension_numbers = #tpu.dot_dimension_numbers<[1], [0], [0], [1], [0, 0, 1, 1], [], []>} : vector<96x32xf32>, vector<32x128xf32>, vector<96x128xf32> -> vector<96x128xf32>
    %c0_5 = arith.constant 0 : index
    %c0_6 = arith.constant 0 : index
    %11 = vector.load %arg3[%c0_5, %c0_6] : memref<96x1xf32, #tpu.memory_space<vmem>>, vector<96x1xf32>
    %12 = vector.broadcast %11 : vector<96x1xf32> to vector<96x128xf32>
    %13 = arith.addf %10, %12 : vector<96x128xf32>
    %14 = vector.extract_strided_slice %13 {offsets = [0, 0], sizes = [32, 128], strides = [1, 1]} : vector<96x128xf32> to vector<32x128xf32>
    %15 = vector.extract_strided_slice %13 {offsets = [32, 0], sizes = [64, 128], strides = [1, 1]} : vector<96x128xf32> to vector<64x128xf32>
    %16 = tpu.iota {dimensions = array<i32: 1>} : vector<1x128xi32>
    %c8_i32 = arith.constant 8 : i32
    %c0_i32 = arith.constant 0 : i32
    %17 = arith.cmpi eq, %c8_i32, %c0_i32 : i32
    %c1_i32 = arith.constant 1 : i32
    %18 = arith.select %17, %c1_i32, %c8_i32 : i32
    %19 = vector.broadcast %18 : i32 to vector<1x128xi32>
    %20 = arith.remsi %16, %19 : vector<1x128xi32>
    %c0_i32_7 = arith.constant 0 : i32
    %21 = vector.broadcast %c0_i32_7 : i32 to vector<1x128xi32>
    %22 = arith.cmpi ne, %20, %21 : vector<1x128xi32>
    %c0_i32_8 = arith.constant 0 : i32
    %23 = vector.broadcast %c0_i32_8 : i32 to vector<1x128xi32>
    %24 = arith.cmpi slt, %20, %23 : vector<1x128xi32>
    %c0_i32_9 = arith.constant 0 : i32
    %25 = arith.cmpi slt, %18, %c0_i32_9 : i32
    %26 = vector.broadcast %25 : i1 to vector<1x128xi1>
    %27 = vector.broadcast %26 : vector<1x128xi1> to vector<1x128xi1>
    %28 = arith.xori %24, %27 : vector<1x128xi1>
    %29 = arith.andi %28, %22 : vector<1x128xi1>
    %30 = vector.broadcast %18 : i32 to vector<1x128xi32>
    %31 = arith.addi %20, %30 : vector<1x128xi32>
    %32 = arith.select %29, %31, %20 : vector<1x128xi1>, vector<1x128xi32>
    %33 = vector.extract_strided_slice %15 {offsets = [0, 0], sizes = [32, 128], strides = [1, 1]} : vector<64x128xf32> to vector<32x128xf32>
    %34 = vector.extract_strided_slice %15 {offsets = [32, 0], sizes = [32, 128], strides = [1, 1]} : vector<64x128xf32> to vector<32x128xf32>
    %35 = vector.extract_strided_slice %14 {offsets = [0, 0], sizes = [8, 128], strides = [1, 1]} : vector<32x128xf32> to vector<8x128xf32>
    %36 = vector.extract_strided_slice %33 {offsets = [0, 0], sizes = [8, 128], strides = [1, 1]} : vector<32x128xf32> to vector<8x128xf32>
    %37 = arith.mulf %35, %36 : vector<8x128xf32>
    %cst_10 = arith.constant dense<0.000000e+00> : vector<128xf32>
    %38 = vector.multi_reduction <add>, %37, %cst_10 [0] : vector<8x128xf32> to vector<128xf32>
    %39 = vector.shape_cast %38 : vector<128xf32> to vector<1x128xf32>
    %40 = vector.extract_strided_slice %14 {offsets = [8, 0], sizes = [8, 128], strides = [1, 1]} : vector<32x128xf32> to vector<8x128xf32>
    %41 = vector.extract_strided_slice %33 {offsets = [8, 0], sizes = [8, 128], strides = [1, 1]} : vector<32x128xf32> to vector<8x128xf32>
    %42 = arith.mulf %40, %41 : vector<8x128xf32>
    %cst_11 = arith.constant dense<0.000000e+00> : vector<128xf32>
    %43 = vector.multi_reduction <add>, %42, %cst_11 [0] : vector<8x128xf32> to vector<128xf32>
    %44 = vector.shape_cast %43 : vector<128xf32> to vector<1x128xf32>
    %45 = vector.extract_strided_slice %14 {offsets = [16, 0], sizes = [8, 128], strides = [1, 1]} : vector<32x128xf32> to vector<8x128xf32>
    %46 = vector.extract_strided_slice %33 {offsets = [16, 0], sizes = [8, 128], strides = [1, 1]} : vector<32x128xf32> to vector<8x128xf32>
    %47 = arith.mulf %45, %46 : vector<8x128xf32>
    %cst_12 = arith.constant dense<0.000000e+00> : vector<128xf32>
    %48 = vector.multi_reduction <add>, %47, %cst_12 [0] : vector<8x128xf32> to vector<128xf32>
    %49 = vector.shape_cast %48 : vector<128xf32> to vector<1x128xf32>
    %50 = vector.extract_strided_slice %14 {offsets = [24, 0], sizes = [8, 128], strides = [1, 1]} : vector<32x128xf32> to vector<8x128xf32>
    %51 = vector.extract_strided_slice %33 {offsets = [24, 0], sizes = [8, 128], strides = [1, 1]} : vector<32x128xf32> to vector<8x128xf32>
    %52 = arith.mulf %50, %51 : vector<8x128xf32>
    %cst_13 = arith.constant dense<0.000000e+00> : vector<128xf32>
    %53 = vector.multi_reduction <add>, %52, %cst_13 [0] : vector<8x128xf32> to vector<128xf32>
    %54 = vector.shape_cast %53 : vector<128xf32> to vector<1x128xf32>
    %55 = tpu.concatenate %39, %44, %49, %54 in 0 : vector<1x128xf32>, vector<1x128xf32>, vector<1x128xf32>, vector<1x128xf32> -> vector<4x128xf32>
    %56 = vector.extract_strided_slice %15 {offsets = [0, 1], sizes = [64, 127], strides = [1, 1]} : vector<64x128xf32> to vector<64x127xf32>
    %57 = vector.extract_strided_slice %15 {offsets = [0, 0], sizes = [64, 1], strides = [1, 1]} : vector<64x128xf32> to vector<64x1xf32>
    %58 = tpu.concatenate %56, %57 in 1 : vector<64x127xf32>, vector<64x1xf32> -> vector<64x128xf32>
    %59 = vector.extract_strided_slice %15 {offsets = [0, 121], sizes = [64, 7], strides = [1, 1]} : vector<64x128xf32> to vector<64x7xf32>
    %60 = vector.extract_strided_slice %15 {offsets = [0, 0], sizes = [64, 121], strides = [1, 1]} : vector<64x128xf32> to vector<64x121xf32>
    %61 = tpu.concatenate %59, %60 in 1 : vector<64x7xf32>, vector<64x121xf32> -> vector<64x128xf32>
    %c7_i32 = arith.constant 7 : i32
    %62 = vector.broadcast %c7_i32 : i32 to vector<1x128xi32>
    %63 = arith.cmpi slt, %32, %62 : vector<1x128xi32>
    %64 = vector.shape_cast %63 : vector<1x128xi1> to vector<1x128xi1>
    %65 = vector.broadcast %64 : vector<1x128xi1> to vector<64x128xi1>
    %66 = arith.select %65, %58, %61 : vector<64x128xi1>, vector<64x128xf32>
    %67 = vector.extract_strided_slice %66 {offsets = [0, 0], sizes = [32, 128], strides = [1, 1]} : vector<64x128xf32> to vector<32x128xf32>
    %68 = vector.extract_strided_slice %66 {offsets = [32, 0], sizes = [32, 128], strides = [1, 1]} : vector<64x128xf32> to vector<32x128xf32>
    %69 = vector.extract_strided_slice %14 {offsets = [0, 0], sizes = [8, 128], strides = [1, 1]} : vector<32x128xf32> to vector<8x128xf32>
    %70 = vector.extract_strided_slice %67 {offsets = [0, 0], sizes = [8, 128], strides = [1, 1]} : vector<32x128xf32> to vector<8x128xf32>
    %71 = arith.mulf %69, %70 : vector<8x128xf32>
    %cst_14 = arith.constant dense<0.000000e+00> : vector<128xf32>
    %72 = vector.multi_reduction <add>, %71, %cst_14 [0] : vector<8x128xf32> to vector<128xf32>
    %73 = vector.shape_cast %72 : vector<128xf32> to vector<1x128xf32>
    %74 = vector.extract_strided_slice %14 {offsets = [8, 0], sizes = [8, 128], strides = [1, 1]} : vector<32x128xf32> to vector<8x128xf32>
    %75 = vector.extract_strided_slice %67 {offsets = [8, 0], sizes = [8, 128], strides = [1, 1]} : vector<32x128xf32> to vector<8x128xf32>
    %76 = arith.mulf %74, %75 : vector<8x128xf32>
    %cst_15 = arith.constant dense<0.000000e+00> : vector<128xf32>
    %77 = vector.multi_reduction <add>, %76, %cst_15 [0] : vector<8x128xf32> to vector<128xf32>
    %78 = vector.shape_cast %77 : vector<128xf32> to vector<1x128xf32>
    %79 = vector.extract_strided_slice %14 {offsets = [16, 0], sizes = [8, 128], strides = [1, 1]} : vector<32x128xf32> to vector<8x128xf32>
    %80 = vector.extract_strided_slice %67 {offsets = [16, 0], sizes = [8, 128], strides = [1, 1]} : vector<32x128xf32> to vector<8x128xf32>
    %81 = arith.mulf %79, %80 : vector<8x128xf32>
    %cst_16 = arith.constant dense<0.000000e+00> : vector<128xf32>
    %82 = vector.multi_reduction <add>, %81, %cst_16 [0] : vector<8x128xf32> to vector<128xf32>
    %83 = vector.shape_cast %82 : vector<128xf32> to vector<1x128xf32>
    %84 = vector.extract_strided_slice %14 {offsets = [24, 0], sizes = [8, 128], strides = [1, 1]} : vector<32x128xf32> to vector<8x128xf32>
    %85 = vector.extract_strided_slice %67 {offsets = [24, 0], sizes = [8, 128], strides = [1, 1]} : vector<32x128xf32> to vector<8x128xf32>
    %86 = arith.mulf %84, %85 : vector<8x128xf32>
    %cst_17 = arith.constant dense<0.000000e+00> : vector<128xf32>
    %87 = vector.multi_reduction <add>, %86, %cst_17 [0] : vector<8x128xf32> to vector<128xf32>
    %88 = vector.shape_cast %87 : vector<128xf32> to vector<1x128xf32>
    %89 = tpu.concatenate %73, %78, %83, %88 in 0 : vector<1x128xf32>, vector<1x128xf32>, vector<1x128xf32>, vector<1x128xf32> -> vector<4x128xf32>
    %90 = vector.extract_strided_slice %15 {offsets = [0, 2], sizes = [64, 126], strides = [1, 1]} : vector<64x128xf32> to vector<64x126xf32>
    %91 = vector.extract_strided_slice %15 {offsets = [0, 0], sizes = [64, 2], strides = [1, 1]} : vector<64x128xf32> to vector<64x2xf32>
    %92 = tpu.concatenate %90, %91 in 1 : vector<64x126xf32>, vector<64x2xf32> -> vector<64x128xf32>
    %93 = vector.extract_strided_slice %15 {offsets = [0, 122], sizes = [64, 6], strides = [1, 1]} : vector<64x128xf32> to vector<64x6xf32>
    %94 = vector.extract_strided_slice %15 {offsets = [0, 0], sizes = [64, 122], strides = [1, 1]} : vector<64x128xf32> to vector<64x122xf32>
    %95 = tpu.concatenate %93, %94 in 1 : vector<64x6xf32>, vector<64x122xf32> -> vector<64x128xf32>
    %c6_i32 = arith.constant 6 : i32
    %96 = vector.broadcast %c6_i32 : i32 to vector<1x128xi32>
    %97 = arith.cmpi slt, %32, %96 : vector<1x128xi32>
    %98 = vector.shape_cast %97 : vector<1x128xi1> to vector<1x128xi1>
    %99 = vector.broadcast %98 : vector<1x128xi1> to vector<64x128xi1>
    %100 = arith.select %99, %92, %95 : vector<64x128xi1>, vector<64x128xf32>
    %101 = vector.extract_strided_slice %100 {offsets = [0, 0], sizes = [32, 128], strides = [1, 1]} : vector<64x128xf32> to vector<32x128xf32>
    %102 = vector.extract_strided_slice %100 {offsets = [32, 0], sizes = [32, 128], strides = [1, 1]} : vector<64x128xf32> to vector<32x128xf32>
    %103 = vector.extract_strided_slice %14 {offsets = [0, 0], sizes = [8, 128], strides = [1, 1]} : vector<32x128xf32> to vector<8x128xf32>
    %104 = vector.extract_strided_slice %101 {offsets = [0, 0], sizes = [8, 128], strides = [1, 1]} : vector<32x128xf32> to vector<8x128xf32>
    %105 = arith.mulf %103, %104 : vector<8x128xf32>
    %cst_18 = arith.constant dense<0.000000e+00> : vector<128xf32>
    %106 = vector.multi_reduction <add>, %105, %cst_18 [0] : vector<8x128xf32> to vector<128xf32>
    %107 = vector.shape_cast %106 : vector<128xf32> to vector<1x128xf32>
    %108 = vector.extract_strided_slice %14 {offsets = [8, 0], sizes = [8, 128], strides = [1, 1]} : vector<32x128xf32> to vector<8x128xf32>
    %109 = vector.extract_strided_slice %101 {offsets = [8, 0], sizes = [8, 128], strides = [1, 1]} : vector<32x128xf32> to vector<8x128xf32>
    %110 = arith.mulf %108, %109 : vector<8x128xf32>
    %cst_19 = arith.constant dense<0.000000e+00> : vector<128xf32>
    %111 = vector.multi_reduction <add>, %110, %cst_19 [0] : vector<8x128xf32> to vector<128xf32>
    %112 = vector.shape_cast %111 : vector<128xf32> to vector<1x128xf32>
    %113 = vector.extract_strided_slice %14 {offsets = [16, 0], sizes = [8, 128], strides = [1, 1]} : vector<32x128xf32> to vector<8x128xf32>
    %114 = vector.extract_strided_slice %101 {offsets = [16, 0], sizes = [8, 128], strides = [1, 1]} : vector<32x128xf32> to vector<8x128xf32>
    %115 = arith.mulf %113, %114 : vector<8x128xf32>
    %cst_20 = arith.constant dense<0.000000e+00> : vector<128xf32>
    %116 = vector.multi_reduction <add>, %115, %cst_20 [0] : vector<8x128xf32> to vector<128xf32>
    %117 = vector.shape_cast %116 : vector<128xf32> to vector<1x128xf32>
    %118 = vector.extract_strided_slice %14 {offsets = [24, 0], sizes = [8, 128], strides = [1, 1]} : vector<32x128xf32> to vector<8x128xf32>
    %119 = vector.extract_strided_slice %101 {offsets = [24, 0], sizes = [8, 128], strides = [1, 1]} : vector<32x128xf32> to vector<8x128xf32>
    %120 = arith.mulf %118, %119 : vector<8x128xf32>
    %cst_21 = arith.constant dense<0.000000e+00> : vector<128xf32>
    %121 = vector.multi_reduction <add>, %120, %cst_21 [0] : vector<8x128xf32> to vector<128xf32>
    %122 = vector.shape_cast %121 : vector<128xf32> to vector<1x128xf32>
    %123 = tpu.concatenate %107, %112, %117, %122 in 0 : vector<1x128xf32>, vector<1x128xf32>, vector<1x128xf32>, vector<1x128xf32> -> vector<4x128xf32>
    %124 = vector.extract_strided_slice %15 {offsets = [0, 3], sizes = [64, 125], strides = [1, 1]} : vector<64x128xf32> to vector<64x125xf32>
    %125 = vector.extract_strided_slice %15 {offsets = [0, 0], sizes = [64, 3], strides = [1, 1]} : vector<64x128xf32> to vector<64x3xf32>
    %126 = tpu.concatenate %124, %125 in 1 : vector<64x125xf32>, vector<64x3xf32> -> vector<64x128xf32>
    %127 = vector.extract_strided_slice %15 {offsets = [0, 123], sizes = [64, 5], strides = [1, 1]} : vector<64x128xf32> to vector<64x5xf32>
    %128 = vector.extract_strided_slice %15 {offsets = [0, 0], sizes = [64, 123], strides = [1, 1]} : vector<64x128xf32> to vector<64x123xf32>
    %129 = tpu.concatenate %127, %128 in 1 : vector<64x5xf32>, vector<64x123xf32> -> vector<64x128xf32>
    %c5_i32 = arith.constant 5 : i32
    %130 = vector.broadcast %c5_i32 : i32 to vector<1x128xi32>
    %131 = arith.cmpi slt, %32, %130 : vector<1x128xi32>
    %132 = vector.shape_cast %131 : vector<1x128xi1> to vector<1x128xi1>
    %133 = vector.broadcast %132 : vector<1x128xi1> to vector<64x128xi1>
    %134 = arith.select %133, %126, %129 : vector<64x128xi1>, vector<64x128xf32>
    %135 = vector.extract_strided_slice %134 {offsets = [0, 0], sizes = [32, 128], strides = [1, 1]} : vector<64x128xf32> to vector<32x128xf32>
    %136 = vector.extract_strided_slice %134 {offsets = [32, 0], sizes = [32, 128], strides = [1, 1]} : vector<64x128xf32> to vector<32x128xf32>
    %137 = vector.extract_strided_slice %14 {offsets = [0, 0], sizes = [8, 128], strides = [1, 1]} : vector<32x128xf32> to vector<8x128xf32>
    %138 = vector.extract_strided_slice %135 {offsets = [0, 0], sizes = [8, 128], strides = [1, 1]} : vector<32x128xf32> to vector<8x128xf32>
    %139 = arith.mulf %137, %138 : vector<8x128xf32>
    %cst_22 = arith.constant dense<0.000000e+00> : vector<128xf32>
    %140 = vector.multi_reduction <add>, %139, %cst_22 [0] : vector<8x128xf32> to vector<128xf32>
    %141 = vector.shape_cast %140 : vector<128xf32> to vector<1x128xf32>
    %142 = vector.extract_strided_slice %14 {offsets = [8, 0], sizes = [8, 128], strides = [1, 1]} : vector<32x128xf32> to vector<8x128xf32>
    %143 = vector.extract_strided_slice %135 {offsets = [8, 0], sizes = [8, 128], strides = [1, 1]} : vector<32x128xf32> to vector<8x128xf32>
    %144 = arith.mulf %142, %143 : vector<8x128xf32>
    %cst_23 = arith.constant dense<0.000000e+00> : vector<128xf32>
    %145 = vector.multi_reduction <add>, %144, %cst_23 [0] : vector<8x128xf32> to vector<128xf32>
    %146 = vector.shape_cast %145 : vector<128xf32> to vector<1x128xf32>
    %147 = vector.extract_strided_slice %14 {offsets = [16, 0], sizes = [8, 128], strides = [1, 1]} : vector<32x128xf32> to vector<8x128xf32>
    %148 = vector.extract_strided_slice %135 {offsets = [16, 0], sizes = [8, 128], strides = [1, 1]} : vector<32x128xf32> to vector<8x128xf32>
    %149 = arith.mulf %147, %148 : vector<8x128xf32>
    %cst_24 = arith.constant dense<0.000000e+00> : vector<128xf32>
    %150 = vector.multi_reduction <add>, %149, %cst_24 [0] : vector<8x128xf32> to vector<128xf32>
    %151 = vector.shape_cast %150 : vector<128xf32> to vector<1x128xf32>
    %152 = vector.extract_strided_slice %14 {offsets = [24, 0], sizes = [8, 128], strides = [1, 1]} : vector<32x128xf32> to vector<8x128xf32>
    %153 = vector.extract_strided_slice %135 {offsets = [24, 0], sizes = [8, 128], strides = [1, 1]} : vector<32x128xf32> to vector<8x128xf32>
    %154 = arith.mulf %152, %153 : vector<8x128xf32>
    %cst_25 = arith.constant dense<0.000000e+00> : vector<128xf32>
    %155 = vector.multi_reduction <add>, %154, %cst_25 [0] : vector<8x128xf32> to vector<128xf32>
    %156 = vector.shape_cast %155 : vector<128xf32> to vector<1x128xf32>
    %157 = tpu.concatenate %141, %146, %151, %156 in 0 : vector<1x128xf32>, vector<1x128xf32>, vector<1x128xf32>, vector<1x128xf32> -> vector<4x128xf32>
    %158 = vector.extract_strided_slice %15 {offsets = [0, 4], sizes = [64, 124], strides = [1, 1]} : vector<64x128xf32> to vector<64x124xf32>
    %159 = vector.extract_strided_slice %15 {offsets = [0, 0], sizes = [64, 4], strides = [1, 1]} : vector<64x128xf32> to vector<64x4xf32>
    %160 = tpu.concatenate %158, %159 in 1 : vector<64x124xf32>, vector<64x4xf32> -> vector<64x128xf32>
    %161 = vector.extract_strided_slice %15 {offsets = [0, 124], sizes = [64, 4], strides = [1, 1]} : vector<64x128xf32> to vector<64x4xf32>
    %162 = vector.extract_strided_slice %15 {offsets = [0, 0], sizes = [64, 124], strides = [1, 1]} : vector<64x128xf32> to vector<64x124xf32>
    %163 = tpu.concatenate %161, %162 in 1 : vector<64x4xf32>, vector<64x124xf32> -> vector<64x128xf32>
    %c4_i32 = arith.constant 4 : i32
    %164 = vector.broadcast %c4_i32 : i32 to vector<1x128xi32>
    %165 = arith.cmpi slt, %32, %164 : vector<1x128xi32>
    %166 = vector.shape_cast %165 : vector<1x128xi1> to vector<1x128xi1>
    %167 = vector.broadcast %166 : vector<1x128xi1> to vector<64x128xi1>
    %168 = arith.select %167, %160, %163 : vector<64x128xi1>, vector<64x128xf32>
    %169 = vector.extract_strided_slice %168 {offsets = [0, 0], sizes = [32, 128], strides = [1, 1]} : vector<64x128xf32> to vector<32x128xf32>
    %170 = vector.extract_strided_slice %168 {offsets = [32, 0], sizes = [32, 128], strides = [1, 1]} : vector<64x128xf32> to vector<32x128xf32>
    %171 = vector.extract_strided_slice %14 {offsets = [0, 0], sizes = [8, 128], strides = [1, 1]} : vector<32x128xf32> to vector<8x128xf32>
    %172 = vector.extract_strided_slice %169 {offsets = [0, 0], sizes = [8, 128], strides = [1, 1]} : vector<32x128xf32> to vector<8x128xf32>
    %173 = arith.mulf %171, %172 : vector<8x128xf32>
    %cst_26 = arith.constant dense<0.000000e+00> : vector<128xf32>
    %174 = vector.multi_reduction <add>, %173, %cst_26 [0] : vector<8x128xf32> to vector<128xf32>
    %175 = vector.shape_cast %174 : vector<128xf32> to vector<1x128xf32>
    %176 = vector.extract_strided_slice %14 {offsets = [8, 0], sizes = [8, 128], strides = [1, 1]} : vector<32x128xf32> to vector<8x128xf32>
    %177 = vector.extract_strided_slice %169 {offsets = [8, 0], sizes = [8, 128], strides = [1, 1]} : vector<32x128xf32> to vector<8x128xf32>
    %178 = arith.mulf %176, %177 : vector<8x128xf32>
    %cst_27 = arith.constant dense<0.000000e+00> : vector<128xf32>
    %179 = vector.multi_reduction <add>, %178, %cst_27 [0] : vector<8x128xf32> to vector<128xf32>
    %180 = vector.shape_cast %179 : vector<128xf32> to vector<1x128xf32>
    %181 = vector.extract_strided_slice %14 {offsets = [16, 0], sizes = [8, 128], strides = [1, 1]} : vector<32x128xf32> to vector<8x128xf32>
    %182 = vector.extract_strided_slice %169 {offsets = [16, 0], sizes = [8, 128], strides = [1, 1]} : vector<32x128xf32> to vector<8x128xf32>
    %183 = arith.mulf %181, %182 : vector<8x128xf32>
    %cst_28 = arith.constant dense<0.000000e+00> : vector<128xf32>
    %184 = vector.multi_reduction <add>, %183, %cst_28 [0] : vector<8x128xf32> to vector<128xf32>
    %185 = vector.shape_cast %184 : vector<128xf32> to vector<1x128xf32>
    %186 = vector.extract_strided_slice %14 {offsets = [24, 0], sizes = [8, 128], strides = [1, 1]} : vector<32x128xf32> to vector<8x128xf32>
    %187 = vector.extract_strided_slice %169 {offsets = [24, 0], sizes = [8, 128], strides = [1, 1]} : vector<32x128xf32> to vector<8x128xf32>
    %188 = arith.mulf %186, %187 : vector<8x128xf32>
    %cst_29 = arith.constant dense<0.000000e+00> : vector<128xf32>
    %189 = vector.multi_reduction <add>, %188, %cst_29 [0] : vector<8x128xf32> to vector<128xf32>
    %190 = vector.shape_cast %189 : vector<128xf32> to vector<1x128xf32>
    %191 = tpu.concatenate %175, %180, %185, %190 in 0 : vector<1x128xf32>, vector<1x128xf32>, vector<1x128xf32>, vector<1x128xf32> -> vector<4x128xf32>
    %192 = vector.extract_strided_slice %15 {offsets = [0, 5], sizes = [64, 123], strides = [1, 1]} : vector<64x128xf32> to vector<64x123xf32>
    %193 = vector.extract_strided_slice %15 {offsets = [0, 0], sizes = [64, 5], strides = [1, 1]} : vector<64x128xf32> to vector<64x5xf32>
    %194 = tpu.concatenate %192, %193 in 1 : vector<64x123xf32>, vector<64x5xf32> -> vector<64x128xf32>
    %195 = vector.extract_strided_slice %15 {offsets = [0, 125], sizes = [64, 3], strides = [1, 1]} : vector<64x128xf32> to vector<64x3xf32>
    %196 = vector.extract_strided_slice %15 {offsets = [0, 0], sizes = [64, 125], strides = [1, 1]} : vector<64x128xf32> to vector<64x125xf32>
    %197 = tpu.concatenate %195, %196 in 1 : vector<64x3xf32>, vector<64x125xf32> -> vector<64x128xf32>
    %c3_i32 = arith.constant 3 : i32
    %198 = vector.broadcast %c3_i32 : i32 to vector<1x128xi32>
    %199 = arith.cmpi slt, %32, %198 : vector<1x128xi32>
    %200 = vector.shape_cast %199 : vector<1x128xi1> to vector<1x128xi1>
    %201 = vector.broadcast %200 : vector<1x128xi1> to vector<64x128xi1>
    %202 = arith.select %201, %194, %197 : vector<64x128xi1>, vector<64x128xf32>
    %203 = vector.extract_strided_slice %202 {offsets = [0, 0], sizes = [32, 128], strides = [1, 1]} : vector<64x128xf32> to vector<32x128xf32>
    %204 = vector.extract_strided_slice %202 {offsets = [32, 0], sizes = [32, 128], strides = [1, 1]} : vector<64x128xf32> to vector<32x128xf32>
    %205 = vector.extract_strided_slice %14 {offsets = [0, 0], sizes = [8, 128], strides = [1, 1]} : vector<32x128xf32> to vector<8x128xf32>
    %206 = vector.extract_strided_slice %203 {offsets = [0, 0], sizes = [8, 128], strides = [1, 1]} : vector<32x128xf32> to vector<8x128xf32>
    %207 = arith.mulf %205, %206 : vector<8x128xf32>
    %cst_30 = arith.constant dense<0.000000e+00> : vector<128xf32>
    %208 = vector.multi_reduction <add>, %207, %cst_30 [0] : vector<8x128xf32> to vector<128xf32>
    %209 = vector.shape_cast %208 : vector<128xf32> to vector<1x128xf32>
    %210 = vector.extract_strided_slice %14 {offsets = [8, 0], sizes = [8, 128], strides = [1, 1]} : vector<32x128xf32> to vector<8x128xf32>
    %211 = vector.extract_strided_slice %203 {offsets = [8, 0], sizes = [8, 128], strides = [1, 1]} : vector<32x128xf32> to vector<8x128xf32>
    %212 = arith.mulf %210, %211 : vector<8x128xf32>
    %cst_31 = arith.constant dense<0.000000e+00> : vector<128xf32>
    %213 = vector.multi_reduction <add>, %212, %cst_31 [0] : vector<8x128xf32> to vector<128xf32>
    %214 = vector.shape_cast %213 : vector<128xf32> to vector<1x128xf32>
    %215 = vector.extract_strided_slice %14 {offsets = [16, 0], sizes = [8, 128], strides = [1, 1]} : vector<32x128xf32> to vector<8x128xf32>
    %216 = vector.extract_strided_slice %203 {offsets = [16, 0], sizes = [8, 128], strides = [1, 1]} : vector<32x128xf32> to vector<8x128xf32>
    %217 = arith.mulf %215, %216 : vector<8x128xf32>
    %cst_32 = arith.constant dense<0.000000e+00> : vector<128xf32>
    %218 = vector.multi_reduction <add>, %217, %cst_32 [0] : vector<8x128xf32> to vector<128xf32>
    %219 = vector.shape_cast %218 : vector<128xf32> to vector<1x128xf32>
    %220 = vector.extract_strided_slice %14 {offsets = [24, 0], sizes = [8, 128], strides = [1, 1]} : vector<32x128xf32> to vector<8x128xf32>
    %221 = vector.extract_strided_slice %203 {offsets = [24, 0], sizes = [8, 128], strides = [1, 1]} : vector<32x128xf32> to vector<8x128xf32>
    %222 = arith.mulf %220, %221 : vector<8x128xf32>
    %cst_33 = arith.constant dense<0.000000e+00> : vector<128xf32>
    %223 = vector.multi_reduction <add>, %222, %cst_33 [0] : vector<8x128xf32> to vector<128xf32>
    %224 = vector.shape_cast %223 : vector<128xf32> to vector<1x128xf32>
    %225 = tpu.concatenate %209, %214, %219, %224 in 0 : vector<1x128xf32>, vector<1x128xf32>, vector<1x128xf32>, vector<1x128xf32> -> vector<4x128xf32>
    %226 = vector.extract_strided_slice %15 {offsets = [0, 6], sizes = [64, 122], strides = [1, 1]} : vector<64x128xf32> to vector<64x122xf32>
    %227 = vector.extract_strided_slice %15 {offsets = [0, 0], sizes = [64, 6], strides = [1, 1]} : vector<64x128xf32> to vector<64x6xf32>
    %228 = tpu.concatenate %226, %227 in 1 : vector<64x122xf32>, vector<64x6xf32> -> vector<64x128xf32>
    %229 = vector.extract_strided_slice %15 {offsets = [0, 126], sizes = [64, 2], strides = [1, 1]} : vector<64x128xf32> to vector<64x2xf32>
    %230 = vector.extract_strided_slice %15 {offsets = [0, 0], sizes = [64, 126], strides = [1, 1]} : vector<64x128xf32> to vector<64x126xf32>
    %231 = tpu.concatenate %229, %230 in 1 : vector<64x2xf32>, vector<64x126xf32> -> vector<64x128xf32>
    %c2_i32 = arith.constant 2 : i32
    %232 = vector.broadcast %c2_i32 : i32 to vector<1x128xi32>
    %233 = arith.cmpi slt, %32, %232 : vector<1x128xi32>
    %234 = vector.shape_cast %233 : vector<1x128xi1> to vector<1x128xi1>
    %235 = vector.broadcast %234 : vector<1x128xi1> to vector<64x128xi1>
    %236 = arith.select %235, %228, %231 : vector<64x128xi1>, vector<64x128xf32>
    %237 = vector.extract_strided_slice %236 {offsets = [0, 0], sizes = [32, 128], strides = [1, 1]} : vector<64x128xf32> to vector<32x128xf32>
    %238 = vector.extract_strided_slice %236 {offsets = [32, 0], sizes = [32, 128], strides = [1, 1]} : vector<64x128xf32> to vector<32x128xf32>
    %239 = vector.extract_strided_slice %14 {offsets = [0, 0], sizes = [8, 128], strides = [1, 1]} : vector<32x128xf32> to vector<8x128xf32>
    %240 = vector.extract_strided_slice %237 {offsets = [0, 0], sizes = [8, 128], strides = [1, 1]} : vector<32x128xf32> to vector<8x128xf32>
    %241 = arith.mulf %239, %240 : vector<8x128xf32>
    %cst_34 = arith.constant dense<0.000000e+00> : vector<128xf32>
    %242 = vector.multi_reduction <add>, %241, %cst_34 [0] : vector<8x128xf32> to vector<128xf32>
    %243 = vector.shape_cast %242 : vector<128xf32> to vector<1x128xf32>
    %244 = vector.extract_strided_slice %14 {offsets = [8, 0], sizes = [8, 128], strides = [1, 1]} : vector<32x128xf32> to vector<8x128xf32>
    %245 = vector.extract_strided_slice %237 {offsets = [8, 0], sizes = [8, 128], strides = [1, 1]} : vector<32x128xf32> to vector<8x128xf32>
    %246 = arith.mulf %244, %245 : vector<8x128xf32>
    %cst_35 = arith.constant dense<0.000000e+00> : vector<128xf32>
    %247 = vector.multi_reduction <add>, %246, %cst_35 [0] : vector<8x128xf32> to vector<128xf32>
    %248 = vector.shape_cast %247 : vector<128xf32> to vector<1x128xf32>
    %249 = vector.extract_strided_slice %14 {offsets = [16, 0], sizes = [8, 128], strides = [1, 1]} : vector<32x128xf32> to vector<8x128xf32>
    %250 = vector.extract_strided_slice %237 {offsets = [16, 0], sizes = [8, 128], strides = [1, 1]} : vector<32x128xf32> to vector<8x128xf32>
    %251 = arith.mulf %249, %250 : vector<8x128xf32>
    %cst_36 = arith.constant dense<0.000000e+00> : vector<128xf32>
    %252 = vector.multi_reduction <add>, %251, %cst_36 [0] : vector<8x128xf32> to vector<128xf32>
    %253 = vector.shape_cast %252 : vector<128xf32> to vector<1x128xf32>
    %254 = vector.extract_strided_slice %14 {offsets = [24, 0], sizes = [8, 128], strides = [1, 1]} : vector<32x128xf32> to vector<8x128xf32>
    %255 = vector.extract_strided_slice %237 {offsets = [24, 0], sizes = [8, 128], strides = [1, 1]} : vector<32x128xf32> to vector<8x128xf32>
    %256 = arith.mulf %254, %255 : vector<8x128xf32>
    %cst_37 = arith.constant dense<0.000000e+00> : vector<128xf32>
    %257 = vector.multi_reduction <add>, %256, %cst_37 [0] : vector<8x128xf32> to vector<128xf32>
    %258 = vector.shape_cast %257 : vector<128xf32> to vector<1x128xf32>
    %259 = tpu.concatenate %243, %248, %253, %258 in 0 : vector<1x128xf32>, vector<1x128xf32>, vector<1x128xf32>, vector<1x128xf32> -> vector<4x128xf32>
    %260 = vector.extract_strided_slice %15 {offsets = [0, 7], sizes = [64, 121], strides = [1, 1]} : vector<64x128xf32> to vector<64x121xf32>
    %261 = vector.extract_strided_slice %15 {offsets = [0, 0], sizes = [64, 7], strides = [1, 1]} : vector<64x128xf32> to vector<64x7xf32>
    %262 = tpu.concatenate %260, %261 in 1 : vector<64x121xf32>, vector<64x7xf32> -> vector<64x128xf32>
    %263 = vector.extract_strided_slice %15 {offsets = [0, 127], sizes = [64, 1], strides = [1, 1]} : vector<64x128xf32> to vector<64x1xf32>
    %264 = vector.extract_strided_slice %15 {offsets = [0, 0], sizes = [64, 127], strides = [1, 1]} : vector<64x128xf32> to vector<64x127xf32>
    %265 = tpu.concatenate %263, %264 in 1 : vector<64x1xf32>, vector<64x127xf32> -> vector<64x128xf32>
    %c1_i32_38 = arith.constant 1 : i32
    %266 = vector.broadcast %c1_i32_38 : i32 to vector<1x128xi32>
    %267 = arith.cmpi slt, %32, %266 : vector<1x128xi32>
    %268 = vector.shape_cast %267 : vector<1x128xi1> to vector<1x128xi1>
    %269 = vector.broadcast %268 : vector<1x128xi1> to vector<64x128xi1>
    %270 = arith.select %269, %262, %265 : vector<64x128xi1>, vector<64x128xf32>
    %271 = vector.extract_strided_slice %270 {offsets = [0, 0], sizes = [32, 128], strides = [1, 1]} : vector<64x128xf32> to vector<32x128xf32>
    %272 = vector.extract_strided_slice %270 {offsets = [32, 0], sizes = [32, 128], strides = [1, 1]} : vector<64x128xf32> to vector<32x128xf32>
    %273 = vector.extract_strided_slice %14 {offsets = [0, 0], sizes = [8, 128], strides = [1, 1]} : vector<32x128xf32> to vector<8x128xf32>
    %274 = vector.extract_strided_slice %271 {offsets = [0, 0], sizes = [8, 128], strides = [1, 1]} : vector<32x128xf32> to vector<8x128xf32>
    %275 = arith.mulf %273, %274 : vector<8x128xf32>
    %cst_39 = arith.constant dense<0.000000e+00> : vector<128xf32>
    %276 = vector.multi_reduction <add>, %275, %cst_39 [0] : vector<8x128xf32> to vector<128xf32>
    %277 = vector.shape_cast %276 : vector<128xf32> to vector<1x128xf32>
    %278 = vector.extract_strided_slice %14 {offsets = [8, 0], sizes = [8, 128], strides = [1, 1]} : vector<32x128xf32> to vector<8x128xf32>
    %279 = vector.extract_strided_slice %271 {offsets = [8, 0], sizes = [8, 128], strides = [1, 1]} : vector<32x128xf32> to vector<8x128xf32>
    %280 = arith.mulf %278, %279 : vector<8x128xf32>
    %cst_40 = arith.constant dense<0.000000e+00> : vector<128xf32>
    %281 = vector.multi_reduction <add>, %280, %cst_40 [0] : vector<8x128xf32> to vector<128xf32>
    %282 = vector.shape_cast %281 : vector<128xf32> to vector<1x128xf32>
    %283 = vector.extract_strided_slice %14 {offsets = [16, 0], sizes = [8, 128], strides = [1, 1]} : vector<32x128xf32> to vector<8x128xf32>
    %284 = vector.extract_strided_slice %271 {offsets = [16, 0], sizes = [8, 128], strides = [1, 1]} : vector<32x128xf32> to vector<8x128xf32>
    %285 = arith.mulf %283, %284 : vector<8x128xf32>
    %cst_41 = arith.constant dense<0.000000e+00> : vector<128xf32>
    %286 = vector.multi_reduction <add>, %285, %cst_41 [0] : vector<8x128xf32> to vector<128xf32>
    %287 = vector.shape_cast %286 : vector<128xf32> to vector<1x128xf32>
    %288 = vector.extract_strided_slice %14 {offsets = [24, 0], sizes = [8, 128], strides = [1, 1]} : vector<32x128xf32> to vector<8x128xf32>
    %289 = vector.extract_strided_slice %271 {offsets = [24, 0], sizes = [8, 128], strides = [1, 1]} : vector<32x128xf32> to vector<8x128xf32>
    %290 = arith.mulf %288, %289 : vector<8x128xf32>
    %cst_42 = arith.constant dense<0.000000e+00> : vector<128xf32>
    %291 = vector.multi_reduction <add>, %290, %cst_42 [0] : vector<8x128xf32> to vector<128xf32>
    %292 = vector.shape_cast %291 : vector<128xf32> to vector<1x128xf32>
    %293 = tpu.concatenate %277, %282, %287, %292 in 0 : vector<1x128xf32>, vector<1x128xf32>, vector<1x128xf32>, vector<1x128xf32> -> vector<4x128xf32>
    %294 = arith.maximumf %55, %89 : vector<4x128xf32>
    %295 = arith.maximumf %294, %123 : vector<4x128xf32>
    %296 = arith.maximumf %295, %157 : vector<4x128xf32>
    %297 = arith.maximumf %296, %191 : vector<4x128xf32>
    %298 = arith.maximumf %297, %225 : vector<4x128xf32>
    %299 = arith.maximumf %298, %259 : vector<4x128xf32>
    %300 = arith.maximumf %299, %293 : vector<4x128xf32>
    %301 = arith.subf %55, %300 : vector<4x128xf32>
    %302 = math.exp %301 : vector<4x128xf32>
    %303 = arith.subf %89, %300 : vector<4x128xf32>
    %304 = math.exp %303 : vector<4x128xf32>
    %305 = arith.subf %123, %300 : vector<4x128xf32>
    %306 = math.exp %305 : vector<4x128xf32>
    %307 = arith.subf %157, %300 : vector<4x128xf32>
    %308 = math.exp %307 : vector<4x128xf32>
    %309 = arith.subf %191, %300 : vector<4x128xf32>
    %310 = math.exp %309 : vector<4x128xf32>
    %311 = arith.subf %225, %300 : vector<4x128xf32>
    %312 = math.exp %311 : vector<4x128xf32>
    %313 = arith.subf %259, %300 : vector<4x128xf32>
    %314 = math.exp %313 : vector<4x128xf32>
    %315 = arith.subf %293, %300 : vector<4x128xf32>
    %316 = math.exp %315 : vector<4x128xf32>
    %317 = arith.addf %302, %304 : vector<4x128xf32>
    %318 = arith.addf %317, %306 : vector<4x128xf32>
    %319 = arith.addf %318, %308 : vector<4x128xf32>
    %320 = arith.addf %319, %310 : vector<4x128xf32>
    %321 = arith.addf %320, %312 : vector<4x128xf32>
    %322 = arith.addf %321, %314 : vector<4x128xf32>
    %323 = arith.addf %322, %316 : vector<4x128xf32>
    %cst_43 = arith.constant 1.000000e+00 : f32
    %324 = vector.broadcast %cst_43 : f32 to vector<4x128xf32>
    %325 = arith.divf %324, %323 : vector<4x128xf32>
    %326 = arith.mulf %302, %325 : vector<4x128xf32>
    %327 = arith.mulf %304, %325 : vector<4x128xf32>
    %328 = arith.mulf %306, %325 : vector<4x128xf32>
    %329 = arith.mulf %308, %325 : vector<4x128xf32>
    %330 = arith.mulf %310, %325 : vector<4x128xf32>
    %331 = arith.mulf %312, %325 : vector<4x128xf32>
    %332 = arith.mulf %314, %325 : vector<4x128xf32>
    %333 = arith.mulf %316, %325 : vector<4x128xf32>
    %cst_44 = arith.constant dense<0.000000e+00> : vector<128xf32>
    %334 = vector.multi_reduction <add>, %326, %cst_44 [0] : vector<4x128xf32> to vector<128xf32>
    %335 = vector.shape_cast %334 : vector<128xf32> to vector<1x128xf32>
    %cst_45 = arith.constant dense<0.000000e+00> : vector<128xf32>
    %336 = vector.multi_reduction <add>, %327, %cst_45 [0] : vector<4x128xf32> to vector<128xf32>
    %337 = vector.shape_cast %336 : vector<128xf32> to vector<1x128xf32>
    %cst_46 = arith.constant dense<0.000000e+00> : vector<128xf32>
    %338 = vector.multi_reduction <add>, %328, %cst_46 [0] : vector<4x128xf32> to vector<128xf32>
    %339 = vector.shape_cast %338 : vector<128xf32> to vector<1x128xf32>
    %cst_47 = arith.constant dense<0.000000e+00> : vector<128xf32>
    %340 = vector.multi_reduction <add>, %329, %cst_47 [0] : vector<4x128xf32> to vector<128xf32>
    %341 = vector.shape_cast %340 : vector<128xf32> to vector<1x128xf32>
    %cst_48 = arith.constant dense<0.000000e+00> : vector<128xf32>
    %342 = vector.multi_reduction <add>, %330, %cst_48 [0] : vector<4x128xf32> to vector<128xf32>
    %343 = vector.shape_cast %342 : vector<128xf32> to vector<1x128xf32>
    %cst_49 = arith.constant dense<0.000000e+00> : vector<128xf32>
    %344 = vector.multi_reduction <add>, %331, %cst_49 [0] : vector<4x128xf32> to vector<128xf32>
    %345 = vector.shape_cast %344 : vector<128xf32> to vector<1x128xf32>
    %cst_50 = arith.constant dense<0.000000e+00> : vector<128xf32>
    %346 = vector.multi_reduction <add>, %332, %cst_50 [0] : vector<4x128xf32> to vector<128xf32>
    %347 = vector.shape_cast %346 : vector<128xf32> to vector<1x128xf32>
    %cst_51 = arith.constant dense<0.000000e+00> : vector<128xf32>
    %348 = vector.multi_reduction <add>, %333, %cst_51 [0] : vector<4x128xf32> to vector<128xf32>
    %349 = vector.shape_cast %348 : vector<128xf32> to vector<1x128xf32>
    %350 = tpu.concatenate %335, %337, %339, %341, %343, %345, %347, %349 in 0 : vector<1x128xf32>, vector<1x128xf32>, vector<1x128xf32>, vector<1x128xf32>, vector<1x128xf32>, vector<1x128xf32>, vector<1x128xf32>, vector<1x128xf32> -> vector<8x128xf32>
    %cst_52 = arith.constant 2.500000e-01 : f32
    %351 = vector.broadcast %cst_52 : f32 to vector<8x128xf32>
    %352 = arith.mulf %350, %351 : vector<8x128xf32>
    %c0_53 = arith.constant 0 : index
    %c0_54 = arith.constant 0 : index
    %353 = vector.load %arg7[%c0_53, %c0_54] : memref<8x128xf32, #tpu.memory_space<vmem>>, vector<8x128xf32>
    tpu.vector_store %arg7[%c0_53, %c0_54], %352 {strides = array<i32>} : memref<8x128xf32, #tpu.memory_space<vmem>>, vector<8x128xf32>,
    %354 = vector.extract_strided_slice %326 {offsets = [0, 0], sizes = [1, 128], strides = [1, 1]} : vector<4x128xf32> to vector<1x128xf32>
    %355 = vector.extract_strided_slice %34 {offsets = [0, 0], sizes = [8, 128], strides = [1, 1]} : vector<32x128xf32> to vector<8x128xf32>
    %356 = vector.broadcast %354 : vector<1x128xf32> to vector<8x128xf32>
    %357 = arith.mulf %356, %355 : vector<8x128xf32>
    %358 = vector.extract_strided_slice %327 {offsets = [0, 0], sizes = [1, 128], strides = [1, 1]} : vector<4x128xf32> to vector<1x128xf32>
    %359 = vector.extract_strided_slice %68 {offsets = [0, 0], sizes = [8, 128], strides = [1, 1]} : vector<32x128xf32> to vector<8x128xf32>
    %360 = vector.broadcast %358 : vector<1x128xf32> to vector<8x128xf32>
    %361 = arith.mulf %360, %359 : vector<8x128xf32>
    %362 = arith.addf %357, %361 : vector<8x128xf32>
    %363 = vector.extract_strided_slice %328 {offsets = [0, 0], sizes = [1, 128], strides = [1, 1]} : vector<4x128xf32> to vector<1x128xf32>
    %364 = vector.extract_strided_slice %102 {offsets = [0, 0], sizes = [8, 128], strides = [1, 1]} : vector<32x128xf32> to vector<8x128xf32>
    %365 = vector.broadcast %363 : vector<1x128xf32> to vector<8x128xf32>
    %366 = arith.mulf %365, %364 : vector<8x128xf32>
    %367 = arith.addf %362, %366 : vector<8x128xf32>
    %368 = vector.extract_strided_slice %329 {offsets = [0, 0], sizes = [1, 128], strides = [1, 1]} : vector<4x128xf32> to vector<1x128xf32>
    %369 = vector.extract_strided_slice %136 {offsets = [0, 0], sizes = [8, 128], strides = [1, 1]} : vector<32x128xf32> to vector<8x128xf32>
    %370 = vector.broadcast %368 : vector<1x128xf32> to vector<8x128xf32>
    %371 = arith.mulf %370, %369 : vector<8x128xf32>
    %372 = arith.addf %367, %371 : vector<8x128xf32>
    %373 = vector.extract_strided_slice %330 {offsets = [0, 0], sizes = [1, 128], strides = [1, 1]} : vector<4x128xf32> to vector<1x128xf32>
    %374 = vector.extract_strided_slice %170 {offsets = [0, 0], sizes = [8, 128], strides = [1, 1]} : vector<32x128xf32> to vector<8x128xf32>
    %375 = vector.broadcast %373 : vector<1x128xf32> to vector<8x128xf32>
    %376 = arith.mulf %375, %374 : vector<8x128xf32>
    %377 = arith.addf %372, %376 : vector<8x128xf32>
    %378 = vector.extract_strided_slice %331 {offsets = [0, 0], sizes = [1, 128], strides = [1, 1]} : vector<4x128xf32> to vector<1x128xf32>
    %379 = vector.extract_strided_slice %204 {offsets = [0, 0], sizes = [8, 128], strides = [1, 1]} : vector<32x128xf32> to vector<8x128xf32>
    %380 = vector.broadcast %378 : vector<1x128xf32> to vector<8x128xf32>
    %381 = arith.mulf %380, %379 : vector<8x128xf32>
    %382 = arith.addf %377, %381 : vector<8x128xf32>
    %383 = vector.extract_strided_slice %332 {offsets = [0, 0], sizes = [1, 128], strides = [1, 1]} : vector<4x128xf32> to vector<1x128xf32>
    %384 = vector.extract_strided_slice %238 {offsets = [0, 0], sizes = [8, 128], strides = [1, 1]} : vector<32x128xf32> to vector<8x128xf32>
    %385 = vector.broadcast %383 : vector<1x128xf32> to vector<8x128xf32>
    %386 = arith.mulf %385, %384 : vector<8x128xf32>
    %387 = arith.addf %382, %386 : vector<8x128xf32>
    %388 = vector.extract_strided_slice %333 {offsets = [0, 0], sizes = [1, 128], strides = [1, 1]} : vector<4x128xf32> to vector<1x128xf32>
    %389 = vector.extract_strided_slice %272 {offsets = [0, 0], sizes = [8, 128], strides = [1, 1]} : vector<32x128xf32> to vector<8x128xf32>
    %390 = vector.broadcast %388 : vector<1x128xf32> to vector<8x128xf32>
    %391 = arith.mulf %390, %389 : vector<8x128xf32>
    %392 = arith.addf %387, %391 : vector<8x128xf32>
    %393 = vector.extract_strided_slice %326 {offsets = [1, 0], sizes = [1, 128], strides = [1, 1]} : vector<4x128xf32> to vector<1x128xf32>
    %394 = vector.extract_strided_slice %34 {offsets = [8, 0], sizes = [8, 128], strides = [1, 1]} : vector<32x128xf32> to vector<8x128xf32>
    %395 = vector.broadcast %393 : vector<1x128xf32> to vector<8x128xf32>
    %396 = arith.mulf %395, %394 : vector<8x128xf32>
    %397 = vector.extract_strided_slice %327 {offsets = [1, 0], sizes = [1, 128], strides = [1, 1]} : vector<4x128xf32> to vector<1x128xf32>
    %398 = vector.extract_strided_slice %68 {offsets = [8, 0], sizes = [8, 128], strides = [1, 1]} : vector<32x128xf32> to vector<8x128xf32>
    %399 = vector.broadcast %397 : vector<1x128xf32> to vector<8x128xf32>
    %400 = arith.mulf %399, %398 : vector<8x128xf32>
    %401 = arith.addf %396, %400 : vector<8x128xf32>
    %402 = vector.extract_strided_slice %328 {offsets = [1, 0], sizes = [1, 128], strides = [1, 1]} : vector<4x128xf32> to vector<1x128xf32>
    %403 = vector.extract_strided_slice %102 {offsets = [8, 0], sizes = [8, 128], strides = [1, 1]} : vector<32x128xf32> to vector<8x128xf32>
    %404 = vector.broadcast %402 : vector<1x128xf32> to vector<8x128xf32>
    %405 = arith.mulf %404, %403 : vector<8x128xf32>
    %406 = arith.addf %401, %405 : vector<8x128xf32>
    %407 = vector.extract_strided_slice %329 {offsets = [1, 0], sizes = [1, 128], strides = [1, 1]} : vector<4x128xf32> to vector<1x128xf32>
    %408 = vector.extract_strided_slice %136 {offsets = [8, 0], sizes = [8, 128], strides = [1, 1]} : vector<32x128xf32> to vector<8x128xf32>
    %409 = vector.broadcast %407 : vector<1x128xf32> to vector<8x128xf32>
    %410 = arith.mulf %409, %408 : vector<8x128xf32>
    %411 = arith.addf %406, %410 : vector<8x128xf32>
    %412 = vector.extract_strided_slice %330 {offsets = [1, 0], sizes = [1, 128], strides = [1, 1]} : vector<4x128xf32> to vector<1x128xf32>
    %413 = vector.extract_strided_slice %170 {offsets = [8, 0], sizes = [8, 128], strides = [1, 1]} : vector<32x128xf32> to vector<8x128xf32>
    %414 = vector.broadcast %412 : vector<1x128xf32> to vector<8x128xf32>
    %415 = arith.mulf %414, %413 : vector<8x128xf32>
    %416 = arith.addf %411, %415 : vector<8x128xf32>
    %417 = vector.extract_strided_slice %331 {offsets = [1, 0], sizes = [1, 128], strides = [1, 1]} : vector<4x128xf32> to vector<1x128xf32>
    %418 = vector.extract_strided_slice %204 {offsets = [8, 0], sizes = [8, 128], strides = [1, 1]} : vector<32x128xf32> to vector<8x128xf32>
    %419 = vector.broadcast %417 : vector<1x128xf32> to vector<8x128xf32>
    %420 = arith.mulf %419, %418 : vector<8x128xf32>
    %421 = arith.addf %416, %420 : vector<8x128xf32>
    %422 = vector.extract_strided_slice %332 {offsets = [1, 0], sizes = [1, 128], strides = [1, 1]} : vector<4x128xf32> to vector<1x128xf32>
    %423 = vector.extract_strided_slice %238 {offsets = [8, 0], sizes = [8, 128], strides = [1, 1]} : vector<32x128xf32> to vector<8x128xf32>
    %424 = vector.broadcast %422 : vector<1x128xf32> to vector<8x128xf32>
    %425 = arith.mulf %424, %423 : vector<8x128xf32>
    %426 = arith.addf %421, %425 : vector<8x128xf32>
    %427 = vector.extract_strided_slice %333 {offsets = [1, 0], sizes = [1, 128], strides = [1, 1]} : vector<4x128xf32> to vector<1x128xf32>
    %428 = vector.extract_strided_slice %272 {offsets = [8, 0], sizes = [8, 128], strides = [1, 1]} : vector<32x128xf32> to vector<8x128xf32>
    %429 = vector.broadcast %427 : vector<1x128xf32> to vector<8x128xf32>
    %430 = arith.mulf %429, %428 : vector<8x128xf32>
    %431 = arith.addf %426, %430 : vector<8x128xf32>
    %432 = vector.extract_strided_slice %326 {offsets = [2, 0], sizes = [1, 128], strides = [1, 1]} : vector<4x128xf32> to vector<1x128xf32>
    %433 = vector.extract_strided_slice %34 {offsets = [16, 0], sizes = [8, 128], strides = [1, 1]} : vector<32x128xf32> to vector<8x128xf32>
    %434 = vector.broadcast %432 : vector<1x128xf32> to vector<8x128xf32>
    %435 = arith.mulf %434, %433 : vector<8x128xf32>
    %436 = vector.extract_strided_slice %327 {offsets = [2, 0], sizes = [1, 128], strides = [1, 1]} : vector<4x128xf32> to vector<1x128xf32>
    %437 = vector.extract_strided_slice %68 {offsets = [16, 0], sizes = [8, 128], strides = [1, 1]} : vector<32x128xf32> to vector<8x128xf32>
    %438 = vector.broadcast %436 : vector<1x128xf32> to vector<8x128xf32>
    %439 = arith.mulf %438, %437 : vector<8x128xf32>
    %440 = arith.addf %435, %439 : vector<8x128xf32>
    %441 = vector.extract_strided_slice %328 {offsets = [2, 0], sizes = [1, 128], strides = [1, 1]} : vector<4x128xf32> to vector<1x128xf32>
    %442 = vector.extract_strided_slice %102 {offsets = [16, 0], sizes = [8, 128], strides = [1, 1]} : vector<32x128xf32> to vector<8x128xf32>
    %443 = vector.broadcast %441 : vector<1x128xf32> to vector<8x128xf32>
    %444 = arith.mulf %443, %442 : vector<8x128xf32>
    %445 = arith.addf %440, %444 : vector<8x128xf32>
    %446 = vector.extract_strided_slice %329 {offsets = [2, 0], sizes = [1, 128], strides = [1, 1]} : vector<4x128xf32> to vector<1x128xf32>
    %447 = vector.extract_strided_slice %136 {offsets = [16, 0], sizes = [8, 128], strides = [1, 1]} : vector<32x128xf32> to vector<8x128xf32>
    %448 = vector.broadcast %446 : vector<1x128xf32> to vector<8x128xf32>
    %449 = arith.mulf %448, %447 : vector<8x128xf32>
    %450 = arith.addf %445, %449 : vector<8x128xf32>
    %451 = vector.extract_strided_slice %330 {offsets = [2, 0], sizes = [1, 128], strides = [1, 1]} : vector<4x128xf32> to vector<1x128xf32>
    %452 = vector.extract_strided_slice %170 {offsets = [16, 0], sizes = [8, 128], strides = [1, 1]} : vector<32x128xf32> to vector<8x128xf32>
    %453 = vector.broadcast %451 : vector<1x128xf32> to vector<8x128xf32>
    %454 = arith.mulf %453, %452 : vector<8x128xf32>
    %455 = arith.addf %450, %454 : vector<8x128xf32>
    %456 = vector.extract_strided_slice %331 {offsets = [2, 0], sizes = [1, 128], strides = [1, 1]} : vector<4x128xf32> to vector<1x128xf32>
    %457 = vector.extract_strided_slice %204 {offsets = [16, 0], sizes = [8, 128], strides = [1, 1]} : vector<32x128xf32> to vector<8x128xf32>
    %458 = vector.broadcast %456 : vector<1x128xf32> to vector<8x128xf32>
    %459 = arith.mulf %458, %457 : vector<8x128xf32>
    %460 = arith.addf %455, %459 : vector<8x128xf32>
    %461 = vector.extract_strided_slice %332 {offsets = [2, 0], sizes = [1, 128], strides = [1, 1]} : vector<4x128xf32> to vector<1x128xf32>
    %462 = vector.extract_strided_slice %238 {offsets = [16, 0], sizes = [8, 128], strides = [1, 1]} : vector<32x128xf32> to vector<8x128xf32>
    %463 = vector.broadcast %461 : vector<1x128xf32> to vector<8x128xf32>
    %464 = arith.mulf %463, %462 : vector<8x128xf32>
    %465 = arith.addf %460, %464 : vector<8x128xf32>
    %466 = vector.extract_strided_slice %333 {offsets = [2, 0], sizes = [1, 128], strides = [1, 1]} : vector<4x128xf32> to vector<1x128xf32>
    %467 = vector.extract_strided_slice %272 {offsets = [16, 0], sizes = [8, 128], strides = [1, 1]} : vector<32x128xf32> to vector<8x128xf32>
    %468 = vector.broadcast %466 : vector<1x128xf32> to vector<8x128xf32>
    %469 = arith.mulf %468, %467 : vector<8x128xf32>
    %470 = arith.addf %465, %469 : vector<8x128xf32>
    %471 = vector.extract_strided_slice %326 {offsets = [3, 0], sizes = [1, 128], strides = [1, 1]} : vector<4x128xf32> to vector<1x128xf32>
    %472 = vector.extract_strided_slice %34 {offsets = [24, 0], sizes = [8, 128], strides = [1, 1]} : vector<32x128xf32> to vector<8x128xf32>
    %473 = vector.broadcast %471 : vector<1x128xf32> to vector<8x128xf32>
    %474 = arith.mulf %473, %472 : vector<8x128xf32>
    %475 = vector.extract_strided_slice %327 {offsets = [3, 0], sizes = [1, 128], strides = [1, 1]} : vector<4x128xf32> to vector<1x128xf32>
    %476 = vector.extract_strided_slice %68 {offsets = [24, 0], sizes = [8, 128], strides = [1, 1]} : vector<32x128xf32> to vector<8x128xf32>
    %477 = vector.broadcast %475 : vector<1x128xf32> to vector<8x128xf32>
    %478 = arith.mulf %477, %476 : vector<8x128xf32>
    %479 = arith.addf %474, %478 : vector<8x128xf32>
    %480 = vector.extract_strided_slice %328 {offsets = [3, 0], sizes = [1, 128], strides = [1, 1]} : vector<4x128xf32> to vector<1x128xf32>
    %481 = vector.extract_strided_slice %102 {offsets = [24, 0], sizes = [8, 128], strides = [1, 1]} : vector<32x128xf32> to vector<8x128xf32>
    %482 = vector.broadcast %480 : vector<1x128xf32> to vector<8x128xf32>
    %483 = arith.mulf %482, %481 : vector<8x128xf32>
    %484 = arith.addf %479, %483 : vector<8x128xf32>
    %485 = vector.extract_strided_slice %329 {offsets = [3, 0], sizes = [1, 128], strides = [1, 1]} : vector<4x128xf32> to vector<1x128xf32>
    %486 = vector.extract_strided_slice %136 {offsets = [24, 0], sizes = [8, 128], strides = [1, 1]} : vector<32x128xf32> to vector<8x128xf32>
    %487 = vector.broadcast %485 : vector<1x128xf32> to vector<8x128xf32>
    %488 = arith.mulf %487, %486 : vector<8x128xf32>
    %489 = arith.addf %484, %488 : vector<8x128xf32>
    %490 = vector.extract_strided_slice %330 {offsets = [3, 0], sizes = [1, 128], strides = [1, 1]} : vector<4x128xf32> to vector<1x128xf32>
    %491 = vector.extract_strided_slice %170 {offsets = [24, 0], sizes = [8, 128], strides = [1, 1]} : vector<32x128xf32> to vector<8x128xf32>
    %492 = vector.broadcast %490 : vector<1x128xf32> to vector<8x128xf32>
    %493 = arith.mulf %492, %491 : vector<8x128xf32>
    %494 = arith.addf %489, %493 : vector<8x128xf32>
    %495 = vector.extract_strided_slice %331 {offsets = [3, 0], sizes = [1, 128], strides = [1, 1]} : vector<4x128xf32> to vector<1x128xf32>
    %496 = vector.extract_strided_slice %204 {offsets = [24, 0], sizes = [8, 128], strides = [1, 1]} : vector<32x128xf32> to vector<8x128xf32>
    %497 = vector.broadcast %495 : vector<1x128xf32> to vector<8x128xf32>
    %498 = arith.mulf %497, %496 : vector<8x128xf32>
    %499 = arith.addf %494, %498 : vector<8x128xf32>
    %500 = vector.extract_strided_slice %332 {offsets = [3, 0], sizes = [1, 128], strides = [1, 1]} : vector<4x128xf32> to vector<1x128xf32>
    %501 = vector.extract_strided_slice %238 {offsets = [24, 0], sizes = [8, 128], strides = [1, 1]} : vector<32x128xf32> to vector<8x128xf32>
    %502 = vector.broadcast %500 : vector<1x128xf32> to vector<8x128xf32>
    %503 = arith.mulf %502, %501 : vector<8x128xf32>
    %504 = arith.addf %499, %503 : vector<8x128xf32>
    %505 = vector.extract_strided_slice %333 {offsets = [3, 0], sizes = [1, 128], strides = [1, 1]} : vector<4x128xf32> to vector<1x128xf32>
    %506 = vector.extract_strided_slice %272 {offsets = [24, 0], sizes = [8, 128], strides = [1, 1]} : vector<32x128xf32> to vector<8x128xf32>
    %507 = vector.broadcast %505 : vector<1x128xf32> to vector<8x128xf32>
    %508 = arith.mulf %507, %506 : vector<8x128xf32>
    %509 = arith.addf %504, %508 : vector<8x128xf32>
    %510 = tpu.concatenate %392, %431, %470, %509 in 0 : vector<8x128xf32>, vector<8x128xf32>, vector<8x128xf32>, vector<8x128xf32> -> vector<32x128xf32>
    %c0_55 = arith.constant 0 : index
    %c0_56 = arith.constant 0 : index
    %c0_57 = arith.constant 0 : index
    %511 = vector.load %arg4[%c0_55, %c0_56, %c0_57] : memref<3x32x32xf32, #tpu.memory_space<vmem>>, vector<1x32x32xf32>
    %512 = vector.shape_cast %511 : vector<1x32x32xf32> to vector<32x32xf32>
    %c1 = arith.constant 1 : index
    %c0_58 = arith.constant 0 : index
    %c0_59 = arith.constant 0 : index
    %513 = vector.load %arg4[%c1, %c0_58, %c0_59] : memref<3x32x32xf32, #tpu.memory_space<vmem>>, vector<1x32x32xf32>
    %514 = vector.shape_cast %513 : vector<1x32x32xf32> to vector<32x32xf32>
    %c2 = arith.constant 2 : index
    %c0_60 = arith.constant 0 : index
    %c0_61 = arith.constant 0 : index
    %515 = vector.load %arg4[%c2, %c0_60, %c0_61] : memref<3x32x32xf32, #tpu.memory_space<vmem>>, vector<1x32x32xf32>
    %516 = vector.shape_cast %515 : vector<1x32x32xf32> to vector<32x32xf32>
    %cst_62 = arith.constant dense<0.000000e+00> : vector<32x128xf32>
    %517 = tpu.matmul %512, %510, %cst_62 {dimension_numbers = #tpu.dot_dimension_numbers<[1], [0], [0], [1], [0, 0, 1, 1], [], []>} : vector<32x32xf32>, vector<32x128xf32>, vector<32x128xf32> -> vector<32x128xf32>
    %518 = vector.broadcast %2 : vector<32x1xf32> to vector<32x128xf32>
    %519 = arith.addf %517, %518 : vector<32x128xf32>
    %520 = arith.addf %0, %519 : vector<32x128xf32>
    %cst_63 = arith.constant dense<0.000000e+00> : vector<128xf32>
    %521 = vector.multi_reduction <add>, %520, %cst_63 [0] : vector<32x128xf32> to vector<128xf32>
    %522 = vector.shape_cast %521 : vector<128xf32> to vector<1x128xf32>
    %cst_64 = arith.constant 3.200000e+01 : f32
    %523 = vector.broadcast %cst_64 : f32 to vector<1x128xf32>
    %524 = arith.divf %522, %523 : vector<1x128xf32>
    %525 = vector.broadcast %524 : vector<1x128xf32> to vector<32x128xf32>
    %526 = arith.subf %520, %525 : vector<32x128xf32>
    %527 = arith.mulf %526, %526 : vector<32x128xf32>
    %cst_65 = arith.constant dense<0.000000e+00> : vector<128xf32>
    %528 = vector.multi_reduction <add>, %527, %cst_65 [0] : vector<32x128xf32> to vector<128xf32>
    %529 = vector.shape_cast %528 : vector<128xf32> to vector<1x128xf32>
    %cst_66 = arith.constant 3.200000e+01 : f32
    %530 = vector.broadcast %cst_66 : f32 to vector<1x128xf32>
    %531 = arith.divf %529, %530 : vector<1x128xf32>
    %cst_67 = arith.constant 9.99999974E-6 : f32
    %532 = vector.broadcast %cst_67 : f32 to vector<1x128xf32>
    %533 = arith.addf %531, %532 : vector<1x128xf32>
    %534 = math.rsqrt %533 : vector<1x128xf32>
    %535 = vector.broadcast %534 : vector<1x128xf32> to vector<32x128xf32>
    %536 = arith.mulf %526, %535 : vector<32x128xf32>
    %537 = vector.broadcast %5 : vector<32x1xf32> to vector<32x128xf32>
    %538 = arith.mulf %536, %537 : vector<32x128xf32>
    %539 = vector.broadcast %6 : vector<32x1xf32> to vector<32x128xf32>
    %540 = arith.addf %538, %539 : vector<32x128xf32>
    %cst_68 = arith.constant dense<0.000000e+00> : vector<32x128xf32>
    %541 = tpu.matmul %514, %540, %cst_68 {dimension_numbers = #tpu.dot_dimension_numbers<[1], [0], [0], [1], [0, 0, 1, 1], [], []>} : vector<32x32xf32>, vector<32x128xf32>, vector<32x128xf32> -> vector<32x128xf32>
    %542 = vector.broadcast %3 : vector<32x1xf32> to vector<32x128xf32>
    %543 = arith.addf %541, %542 : vector<32x128xf32>
    %cst_69 = arith.constant 0.000000e+00 : f32
    %544 = vector.broadcast %cst_69 : f32 to vector<32x128xf32>
    %545 = arith.maximumf %543, %544 : vector<32x128xf32>
    %cst_70 = arith.constant dense<0.000000e+00> : vector<32x128xf32>
    %546 = tpu.matmul %516, %545, %cst_70 {dimension_numbers = #tpu.dot_dimension_numbers<[1], [0], [0], [1], [0, 0, 1, 1], [], []>} : vector<32x32xf32>, vector<32x128xf32>, vector<32x128xf32> -> vector<32x128xf32>
    %547 = vector.broadcast %4 : vector<32x1xf32> to vector<32x128xf32>
    %548 = arith.addf %546, %547 : vector<32x128xf32>
    %549 = arith.addf %540, %548 : vector<32x128xf32>
    %cst_71 = arith.constant dense<0.000000e+00> : vector<128xf32>
    %550 = vector.multi_reduction <add>, %549, %cst_71 [0] : vector<32x128xf32> to vector<128xf32>
    %551 = vector.shape_cast %550 : vector<128xf32> to vector<1x128xf32>
    %cst_72 = arith.constant 3.200000e+01 : f32
    %552 = vector.broadcast %cst_72 : f32 to vector<1x128xf32>
    %553 = arith.divf %551, %552 : vector<1x128xf32>
    %554 = vector.broadcast %553 : vector<1x128xf32> to vector<32x128xf32>
    %555 = arith.subf %549, %554 : vector<32x128xf32>
    %556 = arith.mulf %555, %555 : vector<32x128xf32>
    %cst_73 = arith.constant dense<0.000000e+00> : vector<128xf32>
    %557 = vector.multi_reduction <add>, %556, %cst_73 [0] : vector<32x128xf32> to vector<128xf32>
    %558 = vector.shape_cast %557 : vector<128xf32> to vector<1x128xf32>
    %cst_74 = arith.constant 3.200000e+01 : f32
    %559 = vector.broadcast %cst_74 : f32 to vector<1x128xf32>
    %560 = arith.divf %558, %559 : vector<1x128xf32>
    %cst_75 = arith.constant 9.99999974E-6 : f32
    %561 = vector.broadcast %cst_75 : f32 to vector<1x128xf32>
    %562 = arith.addf %560, %561 : vector<1x128xf32>
    %563 = math.rsqrt %562 : vector<1x128xf32>
    %564 = vector.broadcast %563 : vector<1x128xf32> to vector<32x128xf32>
    %565 = arith.mulf %555, %564 : vector<32x128xf32>
    %566 = vector.broadcast %7 : vector<32x1xf32> to vector<32x128xf32>
    %567 = arith.mulf %565, %566 : vector<32x128xf32>
    %568 = vector.broadcast %8 : vector<32x1xf32> to vector<32x128xf32>
    %569 = arith.addf %567, %568 : vector<32x128xf32>
    %c0_76 = arith.constant 0 : index
    %c0_77 = arith.constant 0 : index
    %570 = vector.load %arg6[%c0_76, %c0_77] : memref<32x128xf32, #tpu.memory_space<vmem>>, vector<32x128xf32>
    tpu.vector_store %arg6[%c0_76, %c0_77], %569 {strides = array<i32>} : memref<32x128xf32, #tpu.memory_space<vmem>>, vector<32x128xf32>,
    return
  }
  func.func @transform_0(%arg0: i32) -> (i32, i32) {
    %c0_i32 = arith.constant 0 : i32
    %c0_i32_0 = arith.constant 0 : i32
    return %c0_i32, %arg0 : i32, i32
  }
  func.func @transform_1(%arg0: i32) -> (i32, i32) {
    %c0_i32 = arith.constant 0 : i32
    %c0_i32_0 = arith.constant 0 : i32
    %c0_i32_1 = arith.constant 0 : i32
    return %c0_i32, %c0_i32_0 : i32, i32
  }
  func.func @transform_2(%arg0: i32) -> (i32, i32) {
    %c0_i32 = arith.constant 0 : i32
    %c0_i32_0 = arith.constant 0 : i32
    %c0_i32_1 = arith.constant 0 : i32
    return %c0_i32, %c0_i32_0 : i32, i32
  }
  func.func @transform_3(%arg0: i32) -> (i32, i32, i32) {
    %c0_i32 = arith.constant 0 : i32
    %c0_i32_0 = arith.constant 0 : i32
    %c0_i32_1 = arith.constant 0 : i32
    %c0_i32_2 = arith.constant 0 : i32
    return %c0_i32, %c0_i32_0, %c0_i32_1 : i32, i32, i32
  }
  func.func @transform_4(%arg0: i32) -> (i32, i32) {
    %c0_i32 = arith.constant 0 : i32
    %c0_i32_0 = arith.constant 0 : i32
    %c0_i32_1 = arith.constant 0 : i32
    return %c0_i32, %c0_i32_0 : i32, i32
  }
  func.func @transform_5(%arg0: i32) -> (i32, i32) {
    %c0_i32 = arith.constant 0 : i32
    %c0_i32_0 = arith.constant 0 : i32
    return %c0_i32, %arg0 : i32, i32
  }
  func.func @transform_6(%arg0: i32) -> (i32, i32) {
    %c0_i32 = arith.constant 0 : i32
    %c0_i32_0 = arith.constant 0 : i32
    return %c0_i32, %arg0 : i32, i32
  }
}

</mosaic_0001>

<bundles_post_ra>
// kernel: tpu_custom_call.1
= control target key start
LH: loop header
LB: loop body
LE: loop exit
PB: predicated region body
PF: predicated region fallthrough
CT: control target
= control target key end

     0   :  { %12 = vsyncpa [#allocation3], 0  ;;  %vm116_vm0 = vcmask 261120   ;;  %v2108_v6 = vmov 0   ;;  %s3063_s0 = inlined_call_operand.vmem [shape: f32[32,128], index: 0, kind: input, shape index: {}]   ;;  %s3064_s1 = inlined_call_operand.vmem [shape: f32[96,32], index: 1, kind: input, shape index: {}]   ;;  %s3065_s2 = inlined_call_operand.vmem [shape: f32[96,1], index: 2, kind: input, shape index: {}]   ;;  %s3066_s3 = inlined_call_operand.vmem [shape: f32[3,32,32], index: 3, kind: input, shape index: {}]   ;;  %s3067_s4 = inlined_call_operand.vmem [shape: f32[32,8], index: 4, kind: input, shape index: {}]   ;;  %s3068_s5 = inlined_call_operand.hbm [shape: f32[32,128], index: 5, kind: output, shape index: {0}]   ;;  %s3069_s6 = inlined_call_operand.hbm [shape: f32[8,128], index: 6, kind: output, shape index: {1}]  }
   0x1   :  { %v24_v0 = vld [vmem:[%s3063_s0] sm:$0xff]  ;;  %v25_v1 = vld [vmem:[%s3063_s0 + $0x8] sm:$0xff]  ;;  %v26_v2 = vld [vmem:[%s3063_s0 + $0x10] sm:$0xff]  ;;  %2018 = vset.pattern.permute.xlu0 %v2108_v6  ;;  %2019 = vset.pattern.permute.xlu1 %v2108_v6 }
   0x2   :  { %v1961_v3 = vpack.c.bf16 %v25_v1, %v24_v0  ;;  %v27_v4 = vld [vmem:[%s3063_s0 + $0x18] sm:$0xff]  ;;  %v32_v5 = vld [vmem:[%s3064_s1] sm:$0xff]  ;;  %v50_v9 = vld [vmem:[%s3065_s2 + $0x30] sm:$0xff] }
   0x3   :  { %v1965_v7 = vpack.c.bf16 %v27_v4, %v26_v2  ;;  %1901 = vmatprep.mubr.msk.f32.mxu0 %vm116_vm0, %v32_v5  ;;  %v48_v8 = vld [vmem:[%s3065_s2 + $0x20] sm:$0xff]  ;;  %v49_v10 = vld [vmem:[%s3065_s2 + $0x28] sm:$0xff]  ;;  %88 = vperm.xlu1 %2019, %v50_v9   ;;  %v51_v12 = vld [vmem:[%s3065_s2 + $0x38] sm:$0xff] }
   0x4   :  { %1962 = vmatprep.subr.bf16.mxu0 %v1961_v3  ;;  %78 = vperm.xlu0 %2018, %v48_v8   ;;  %v33_v11 = vld [vmem:[%s3064_s1 + $0x8] sm:$0xff]  ;;  %v34_v13 = vld [vmem:[%s3064_s1 + $0x10] sm:$0xff] }
   0x5   :  { %1964 = vmatpush3.bf16.msra.mxu0 %v1961_v3 }
   0x6   :  { %1966 = vmatprep.subr.bf16.mxu0 %v1965_v7 }
   0x9   :  { %1968 = vmatpush3.bf16.msra.mxu0 %v1965_v7 }
   0xa   :  { %13 = vsyncpa [#allocation5], 0  ;;  %83 = vperm.xlu0 %2018, %v49_v10   ;;  %v44_v14 = vld [vmem:[%s3065_s2] sm:$0xff]  ;;  %93 = vperm.xlu1 %2019, %v51_v12   ;;  %v35_v15 = vld [vmem:[%s3064_s1 + $0x18] sm:$0xff]  ;;  %s2111_s29 = smov 126   ;;  %s2112_s30 = smov 6  }
   0xb   :  { %v45_v16 = vld [vmem:[%s3065_s2 + $0x8] sm:$0xff]  ;;  %v36_v17 = vld [vmem:[%s3064_s1 + $0x20] sm:$0xff]  ;;  %v46_v18 = vld [vmem:[%s3065_s2 + $0x10] sm:$0xff]  ;;  %vm320_vm1 = vcmask 1040384   ;;  %s2113_s7 = smov 125   ;;  %vm322_vm2 = vcmask 1041408  }
   0xc   :  { %1902 = vmatmul.mubr.msk.f32.vlgmr.msra.gmra.mrb[0].mxu0 %vm116_vm0, %v33_v11  ;;  %v37_v19 = vld [vmem:[%s3064_s1 + $0x28] sm:$0xff]  ;;  %v47_v20 = vld [vmem:[%s3065_s2 + $0x18] sm:$0xff]  ;;  %v38_v21 = vld [vmem:[%s3064_s1 + $0x30] sm:$0xff]  ;;  %vm324_vm3 = vcmask 1042432   ;;  %s2114_s8 = smov 5   ;;  %s2115_s9 = smov 124  }
   0xd   :  { %1904 = vmatprep.mubr.msk.f32.mxu0 %vm116_vm0, %v34_v13  ;;  %v52_v22 = vld [vmem:[%s3065_s2 + $0x40] sm:$0xff]  ;;  %v39_v23 = vld [vmem:[%s3064_s1 + $0x38] sm:$0xff]  ;;  %v53_v24 = vld [vmem:[%s3065_s2 + $0x48] sm:$0xff]  ;;  %s2116_s10 = smov 4   ;;  %s2117_s11 = smov 123   ;;  %vm1012_vm11 = vcmask 1043456  }
   0xe   :  { %58 = vperm.xlu0 %2018, %v44_v14   ;;  %63 = vperm.xlu1 %2019, %v45_v16   ;;  %v40_v25 = vld [vmem:[%s3064_s1 + $0x40] sm:$0xff]  ;;  %v54_v26 = vld [vmem:[%s3065_s2 + $0x50] sm:$0xff]  ;;  %v41_v27 = vld [vmem:[%s3064_s1 + $0x48] sm:$0xff]  ;;  %s2118_s12 = smov 3   ;;  %s2119_s13 = smov 122   ;;  %vm1073_vm12 = vcmask 1044480  }
   0xf   :  { %v55_v28 = vld [vmem:[%s3065_s2 + $0x58] sm:$0xff]  ;;  %v42_v29 = vld [vmem:[%s3064_s1 + $0x50] sm:$0xff]  ;;  %s2110_s2 = smov 7   ;;  %s2120_s14 = smov 2   ;;  %vm1075_vm13 = vcmask 1045504   ;;  %vm1077_vm14 = vcmask 1046528  }
  0x10   :  { %1905 = vmatmul.mubr.msk.f32.gmra.mrb[2].mxu0 %vm116_vm0, %v35_v15  ;;  %v43_v30 = vld [vmem:[%s3064_s1 + $0x58] sm:$0xff]  ;;  %s2109_s1 = smov 127   ;;  %s2121_s15 = smov 121  }
  0x11   :  { %1907 = vmatprep.mubr.msk.f32.mxu0 %vm116_vm0, %v36_v17  ;;  %s2122_s16 = smov 1   ;;  %s2129_s28 = smov [#allocation4]  }
  0x12   :  { %68 = vperm.xlu0 %2018, %v46_v18   ;;  %73 = vperm.xlu1 %2019, %v47_v20  }
  0x14   :  { %1908 = vmatmul.mubr.msk.f32.gmra.mrb[4].mxu0 %vm116_vm0, %v37_v19 }
  0x15   :  { %1910 = vmatprep.mubr.msk.f32.mxu0 %vm116_vm0, %v38_v21 }
  0x16   :  { %98 = vperm.xlu0 %2018, %v52_v22   ;;  %103 = vperm.xlu1 %2019, %v53_v24  }
  0x18   :  { %1911 = vmatmul.mubr.msk.f32.gmra.mrb[6].mxu0 %vm116_vm0, %v39_v23 }
  0x19   :  { %1913 = vmatprep.mubr.msk.f32.mxu0 %vm116_vm0, %v40_v25 }
  0x1a   :  { %108 = vperm.xlu0 %2018, %v54_v26   ;;  %113 = vperm.xlu1 %2019, %v55_v28  }
  0x1c   :  { %1914 = vmatmul.mubr.msk.f32.gmra.mrb[8].mxu0 %vm116_vm0, %v41_v27  ;;  %v278_v27 = vlaneseq }
  0x1d   :  { %1916 = vmatprep.mubr.msk.f32.mxu0 %vm116_vm0, %v42_v29 }
  0x1e   :  { %v279_v29 = vand.u32 127, %v278_v27 }
  0x20   :  { %1917 = vmatmul.mubr.msk.f32.gmra.mrb[10].mxu0 %vm116_vm0, %v43_v30 }
  0x82   :  { %v89_v31 = vpop.permute.xlu1 %88 }
  0x83   :  { %v79_v32 = vpop.permute.xlu0 %78 }
  0x89   :  { %v94_v33 = vpop.permute.xlu1 %93  ;;  %v84_v35 = vpop.permute.xlu0 %83 }
  0x8d   :  { %v64_v37 = vpop.permute.xlu1 %63  ;;  %v59_v40 = vpop.permute.xlu0 %58 }
  0x91   :  { %v74_v46 = vpop.permute.xlu1 %73  ;;  %v69_v51 = vpop.permute.xlu0 %68 }
  0x95   :  { %v104_v26 = vpop.permute.xlu1 %103  ;;  %v99_v28 = vpop.permute.xlu0 %98 }
  0xdf   :  { %v1903_v34 = vpop.f32.mrb[0].mxu0 }
  0xe0   :  { %v219_v36 = vpop.f32.mrb[1].mxu0  ;;  %v2264_v42 = vadd.f32 %v1903_v34, %v64_v37  ;;  %v2426_v34 = vand.u32 7, %v279_v29 }
  0xe1   :  { %v2268_v45 = vadd.f32 %v219_v36, %v59_v40 }
  0xe2   :  { %vm382_vm4 = vcmp.lt.s32.totalorder %v2426_v34, 7  ;;  %vm472_vm5 = vcmp.lt.s32.totalorder %v2426_v34, 6  ;;  %vm562_vm6 = vcmp.lt.s32.totalorder %v2426_v34, 5  ;;  %vm652_vm7 = vcmp.lt.s32.totalorder %v2426_v34, 4 }
  0xe3   :  { %v1906_v38 = vpop.f32.mrb[2].mxu0  ;;  %vm742_vm8 = vcmp.lt.s32.totalorder %v2426_v34, 3  ;;  %vm832_vm9 = vcmp.lt.s32.totalorder %v2426_v34, 2  ;;  %vm922_vm10 = vcmp.lt.s32.totalorder %v2426_v34, 1  ;;  %v1272_v34 = vld [vmem:[%s3066_s3 + $0x18] sm:$0xff] }
  0xe4   :  { %v229_v39 = vpop.f32.mrb[3].mxu0  ;;  %v2280_v52 = vadd.f32 %v1906_v38, %v74_v46 }
  0xe5   :  { %v2284_v56 = vadd.f32 %v229_v39, %v69_v51 }
  0xe7   :  { %v1909_v41 = vpop.f32.mrb[4].mxu0 }
  0xe8   :  { %v2266_v43 = vadd.f32 %v1909_v41, %v84_v35  ;;  %v239_v44 = vpop.f32.mrb[5].mxu0 }
  0xe9   :  { %v2270_v47 = vadd.f32 %v239_v44, %v79_v32  ;;  %v2419_v32 = vpop.permute.xlu0 %108 }
  0xea   :  { %336 = vrot.lane.b32.xlu1 %v2266_v43, %s2109_s1  ;;  %v299_v48 = vmul.f32 %v2266_v43, %v2264_v42 }
  0xeb   :  { %v1912_v49 = vpop.f32.mrb[6].mxu0  ;;  %334 = vrot.lane.b32.xlu0 %v2270_v47, %s2109_s1  ;;  %v292_v50 = vmul.f32 %v2270_v47, %v2268_v45 }
  0xec   :  { %v2282_v53 = vadd.f32 %v1912_v49, %v94_v33  ;;  %v249_v54 = vpop.f32.mrb[7].mxu0  ;;  %v300_v55 = vrot.slane %v299_v48, 4 }
  0xed   :  { %v2286_v57 = vadd.f32 %v249_v54, %v89_v31  ;;  %v293_v58 = vrot.slane %v292_v50, 4  ;;  %v2417_v31 = vpop.permute.xlu1 %113 }
  0xee   :  { %360 = vrot.lane.b32.xlu1 %v2266_v43, %s2110_s2  ;;  %v301_v59 = vadd.f32 %v300_v55, %v299_v48  ;;  %v313_v60 = vmul.f32 %v2282_v53, %v2280_v52 }
  0xef   :  { %v2292_v61 = vpop.f32.mrb[8].mxu0  ;;  %358 = vrot.lane.b32.xlu0 %v2270_v47, %s2110_s2  ;;  %v294_v62 = vadd.f32 %v293_v58, %v292_v50  ;;  %v306_v63 = vmul.f32 %v2286_v57, %v2284_v56 }
  0xf0   :  { %v2298_v0 = vpop.f32.mrb[9].mxu0  ;;  %v302_v1 = vrot.slane %v301_v59, 2  ;;  %v314_v2 = vrot.slane %v313_v60, 4  ;;  %v2415_v30 = vadd.f32 %v2292_v61, %v104_v26 }
  0xf1   :  { %v295_v3 = vrot.slane %v294_v62, 2  ;;  %v307_v4 = vrot.slane %v306_v63, 4  ;;  %v2422_v33 = vadd.f32 %v2298_v0, %v99_v28 }
  0xf2   :  { %426 = vrot.lane.b32.xlu1 %v2266_v43, %s2111_s29  ;;  %v303_v5 = vadd.f32 %v302_v1, %v301_v59  ;;  %v315_v6 = vadd.f32 %v314_v2, %v313_v60 }
  0xf3   :  { %v2302_v7 = vpop.f32.mrb[10].mxu0  ;;  %424 = vrot.lane.b32.xlu0 %v2270_v47, %s2111_s29  ;;  %v296_v8 = vadd.f32 %v295_v3, %v294_v62  ;;  %v308_v9 = vadd.f32 %v307_v4, %v306_v63 }
  0xf4   :  { %v2306_v10 = vpop.f32.mrb[11].mxu0  ;;  %v304_v11 = vrot.slane %v303_v5, 1  ;;  %v316_v12 = vrot.slane %v315_v6, 2 }
  0xf5   :  { %v297_v13 = vrot.slane %v296_v8, 1  ;;  %v309_v14 = vrot.slane %v308_v9, 2 }
  0xf6   :  { %450 = vrot.lane.b32.xlu1 %v2266_v43, %s2112_s30  ;;  %v305_v15 = vadd.f32 %v304_v11, %v303_v5  ;;  %v317_v16 = vadd.f32 %v316_v12, %v315_v6 }
  0xf7   :  { %448 = vrot.lane.b32.xlu0 %v2270_v47, %s2112_s30  ;;  %v298_v17 = vadd.f32 %v297_v13, %v296_v8  ;;  %v310_v18 = vadd.f32 %v309_v14, %v308_v9 }
  0xf8   :  { %v318_v19 = vrot.slane %v317_v16, 1 }
  0xf9   :  { %v311_v20 = vrot.slane %v310_v18, 1  ;;  %v321_v21 = vsel %vm320_vm1, %v298_v17, %v305_v15 }
  0xfa   :  { %516 = vrot.lane.b32.xlu1 %v2266_v43, %s2113_s7  ;;  %v319_v23 = vadd.f32 %v318_v19, %v317_v16 }
  0xfb   :  { %514 = vrot.lane.b32.xlu0 %v2270_v47, %s2113_s7  ;;  %v312_v22 = vadd.f32 %v311_v20, %v310_v18 }
  0xfd   :  { %v323_v24 = vsel %vm322_vm2, %v321_v21, %v312_v22 }
  0xfe   :  { %540 = vrot.lane.b32.xlu1 %v2266_v43, %s2114_s8  ;;  %v2321_v25 = vsel %vm324_vm3, %v323_v24, %v319_v23 }
  0xff   :  { %538 = vrot.lane.b32.xlu0 %v2270_v47, %s2114_s8 }
 0x102   :  { %606 = vrot.lane.b32.xlu1 %v2266_v43, %s2115_s9 }
 0x103   :  { %604 = vrot.lane.b32.xlu0 %v2270_v47, %s2115_s9 }
 0x106   :  { %630 = vrot.lane.b32.xlu1 %v2266_v43, %s2116_s10 }
 0x107   :  { %628 = vrot.lane.b32.xlu0 %v2270_v47, %s2116_s10 }
 0x10a   :  { %696 = vrot.lane.b32.xlu1 %v2266_v43, %s2117_s11 }
 0x10b   :  { %694 = vrot.lane.b32.xlu0 %v2270_v47, %s2117_s11 }
 0x10e   :  { %720 = vrot.lane.b32.xlu1 %v2266_v43, %s2118_s12 }
 0x10f   :  { %718 = vrot.lane.b32.xlu0 %v2270_v47, %s2118_s12 }
 0x112   :  { %786 = vrot.lane.b32.xlu1 %v2266_v43, %s2119_s13 }
 0x113   :  { %784 = vrot.lane.b32.xlu0 %v2270_v47, %s2119_s13 }
 0x116   :  { %810 = vrot.lane.b32.xlu1 %v2266_v43, %s2120_s14 }
 0x117   :  { %808 = vrot.lane.b32.xlu0 %v2270_v47, %s2120_s14 }
 0x11a   :  { %876 = vrot.lane.b32.xlu1 %v2266_v43, %s2121_s15 }
 0x11b   :  { %874 = vrot.lane.b32.xlu0 %v2270_v47, %s2121_s15 }
 0x11e   :  { %900 = vrot.lane.b32.xlu1 %v2266_v43, %s2122_s16 }
 0x11f   :  { %898 = vrot.lane.b32.xlu0 %v2270_v47, %s2122_s16 }
 0x122   :  { %364 = vrot.lane.b32.xlu1 %v2282_v53, %s2110_s2 }
 0x123   :  { %340 = vrot.lane.b32.xlu0 %v2282_v53, %s2109_s1 }
 0x126   :  { %454 = vrot.lane.b32.xlu1 %v2282_v53, %s2112_s30 }
 0x127   :  { %430 = vrot.lane.b32.xlu0 %v2282_v53, %s2111_s29 }
 0x12a   :  { %544 = vrot.lane.b32.xlu1 %v2282_v53, %s2114_s8 }
 0x12b   :  { %520 = vrot.lane.b32.xlu0 %v2282_v53, %s2113_s7 }
 0x12e   :  { %634 = vrot.lane.b32.xlu1 %v2282_v53, %s2116_s10 }
 0x12f   :  { %610 = vrot.lane.b32.xlu0 %v2282_v53, %s2115_s9 }
 0x132   :  { %724 = vrot.lane.b32.xlu1 %v2282_v53, %s2118_s12 }
 0x133   :  { %700 = vrot.lane.b32.xlu0 %v2282_v53, %s2117_s11 }
 0x136   :  { %814 = vrot.lane.b32.xlu1 %v2282_v53, %s2120_s14 }
 0x137   :  { %790 = vrot.lane.b32.xlu0 %v2282_v53, %s2119_s13 }
 0x13a   :  { %904 = vrot.lane.b32.xlu1 %v2282_v53, %s2122_s16 }
 0x13b   :  { %880 = vrot.lane.b32.xlu0 %v2282_v53, %s2121_s15 }
 0x13e   :  { %362 = vrot.lane.b32.xlu1 %v2286_v57, %s2110_s2 }
 0x13f   :  { %338 = vrot.lane.b32.xlu0 %v2286_v57, %s2109_s1 }
 0x142   :  { %452 = vrot.lane.b32.xlu1 %v2286_v57, %s2112_s30 }
 0x143   :  { %428 = vrot.lane.b32.xlu0 %v2286_v57, %s2111_s29 }
 0x146   :  { %542 = vrot.lane.b32.xlu1 %v2286_v57, %s2114_s8 }
 0x147   :  { %518 = vrot.lane.b32.xlu0 %v2286_v57, %s2113_s7 }
 0x14a   :  { %632 = vrot.lane.b32.xlu1 %v2286_v57, %s2116_s10 }
 0x14b   :  { %608 = vrot.lane.b32.xlu0 %v2286_v57, %s2115_s9 }
 0x14e   :  { %722 = vrot.lane.b32.xlu1 %v2286_v57, %s2118_s12 }
 0x14f   :  { %698 = vrot.lane.b32.xlu0 %v2286_v57, %s2117_s11 }
 0x152   :  { %812 = vrot.lane.b32.xlu1 %v2286_v57, %s2120_s14 }
 0x153   :  { %788 = vrot.lane.b32.xlu0 %v2286_v57, %s2119_s13 }
 0x156   :  { %902 = vrot.lane.b32.xlu1 %v2286_v57, %s2122_s16 }
 0x157   :  { %878 = vrot.lane.b32.xlu0 %v2286_v57, %s2121_s15 }
 0x15a   :  { %344 = vrot.lane.b32.xlu1 %v2415_v30, %s2109_s1 }
 0x15b   :  { %342 = vrot.lane.b32.xlu0 %v2422_v33, %s2109_s1 }
 0x15c   :  { %v337_v35 = vpop.permute.xlu1 %336 }
 0x15d   :  { %v335_v36 = vpop.permute.xlu0 %334 }
 0x15e   :  { %368 = vrot.lane.b32.xlu1 %v2415_v30, %s2110_s2 }
 0x15f   :  { %366 = vrot.lane.b32.xlu0 %v2422_v33, %s2110_s2 }
 0x160   :  { %v361_v37 = vpop.permute.xlu1 %360 }
 0x161   :  { %v386_v38 = vsel %vm382_vm4, %v337_v35, %v361_v37  ;;  %v359_v39 = vpop.permute.xlu0 %358 }
 0x162   :  { %v400_v40 = vmul.f32 %v386_v38, %v2264_v42  ;;  %v385_v41 = vsel %vm382_vm4, %v335_v36, %v359_v39  ;;  %434 = vrot.lane.b32.xlu1 %v2415_v30, %s2111_s29 }
 0x163   :  { %v393_v43 = vmul.f32 %v385_v41, %v2268_v45  ;;  %432 = vrot.lane.b32.xlu0 %v2422_v33, %s2111_s29 }
 0x164   :  { %v401_v44 = vrot.slane %v400_v40, 4  ;;  %v427_v46 = vpop.permute.xlu1 %426 }
 0x165   :  { %v394_v47 = vrot.slane %v393_v43, 4  ;;  %v425_v48 = vpop.permute.xlu0 %424 }
 0x166   :  { %v402_v49 = vadd.f32 %v401_v44, %v400_v40  ;;  %458 = vrot.lane.b32.xlu1 %v2415_v30, %s2112_s30 }
 0x167   :  { %v395_v50 = vadd.f32 %v394_v47, %v393_v43  ;;  %456 = vrot.lane.b32.xlu0 %v2422_v33, %s2112_s30 }
 0x168   :  { %v403_v51 = vrot.slane %v402_v49, 2  ;;  %v451_v53 = vpop.permute.xlu1 %450 }
 0x169   :  { %v396_v54 = vrot.slane %v395_v50, 2  ;;  %v476_v55 = vsel %vm472_vm5, %v427_v46, %v451_v53  ;;  %v449_v57 = vpop.permute.xlu0 %448 }
 0x16a   :  { %v404_v58 = vadd.f32 %v403_v51, %v402_v49  ;;  %v490_v59 = vmul.f32 %v476_v55, %v2264_v42  ;;  %v475_v60 = vsel %vm472_vm5, %v425_v48, %v449_v57  ;;  %524 = vrot.lane.b32.xlu1 %v2415_v30, %s2113_s7 }
 0x16b   :  { %v397_v61 = vadd.f32 %v396_v54, %v395_v50  ;;  %v483_v62 = vmul.f32 %v475_v60, %v2268_v45  ;;  %522 = vrot.lane.b32.xlu0 %v2422_v33, %s2113_s7 }
 0x16c   :  { %v405_v63 = vrot.slane %v404_v58, 1  ;;  %v491_v0 = vrot.slane %v490_v59, 4  ;;  %v517_v1 = vpop.permute.xlu1 %516 }
 0x16d   :  { %v398_v2 = vrot.slane %v397_v61, 1  ;;  %v484_v3 = vrot.slane %v483_v62, 4  ;;  %v515_v4 = vpop.permute.xlu0 %514 }
 0x16e   :  { %v406_v5 = vadd.f32 %v405_v63, %v404_v58  ;;  %v492_v6 = vadd.f32 %v491_v0, %v490_v59  ;;  %548 = vrot.lane.b32.xlu1 %v2415_v30, %s2114_s8 }
 0x16f   :  { %v399_v8 = vadd.f32 %v398_v2, %v397_v61  ;;  %v485_v9 = vadd.f32 %v484_v3, %v483_v62  ;;  %546 = vrot.lane.b32.xlu0 %v2422_v33, %s2114_s8 }
 0x170   :  { %v493_v11 = vrot.slane %v492_v6, 2  ;;  %v541_v12 = vpop.permute.xlu1 %540 }
 0x171   :  { %v2466_v13 = vsel %vm320_vm1, %v399_v8, %v406_v5  ;;  %v486_v14 = vrot.slane %v485_v9, 2  ;;  %v566_v15 = vsel %vm562_vm6, %v517_v1, %v541_v12  ;;  %v539_v16 = vpop.permute.xlu0 %538 }
 0x172   :  { %v494_v17 = vadd.f32 %v493_v11, %v492_v6  ;;  %v580_v18 = vmul.f32 %v566_v15, %v2264_v42  ;;  %v565_v19 = vsel %vm562_vm6, %v515_v4, %v539_v16  ;;  %614 = vrot.lane.b32.xlu1 %v2415_v30, %s2115_s9 }
 0x173   :  { %v487_v20 = vadd.f32 %v486_v14, %v485_v9  ;;  %v573_v21 = vmul.f32 %v565_v19, %v2268_v45  ;;  %612 = vrot.lane.b32.xlu0 %v2422_v33, %s2115_s9 }
 0x174   :  { %v495_v22 = vrot.slane %v494_v17, 1  ;;  %v581_v23 = vrot.slane %v580_v18, 4  ;;  %v607_v24 = vpop.permute.xlu1 %606 }
 0x175   :  { %v488_v26 = vrot.slane %v487_v20, 1  ;;  %v574_v28 = vrot.slane %v573_v21, 4  ;;  %v605_v29 = vpop.permute.xlu0 %604 }
 0x176   :  { %v496_v35 = vadd.f32 %v495_v22, %v494_v17  ;;  %v582_v36 = vadd.f32 %v581_v23, %v580_v18  ;;  %638 = vrot.lane.b32.xlu1 %v2415_v30, %s2116_s10 }
 0x177   :  { %v489_v37 = vadd.f32 %v488_v26, %v487_v20  ;;  %v575_v38 = vadd.f32 %v574_v28, %v573_v21  ;;  %636 = vrot.lane.b32.xlu0 %v2422_v33, %s2116_s10 }
 0x178   :  { %v583_v39 = vrot.slane %v582_v36, 2  ;;  %v631_v40 = vpop.permute.xlu1 %630 }
 0x179   :  { %v2484_v41 = vsel %vm320_vm1, %v489_v37, %v496_v35  ;;  %v576_v43 = vrot.slane %v575_v38, 2  ;;  %v656_v44 = vsel %vm652_vm7, %v607_v24, %v631_v40  ;;  %v629_v46 = vpop.permute.xlu0 %628 }
 0x17a   :  { %v584_v47 = vadd.f32 %v583_v39, %v582_v36  ;;  %v670_v48 = vmul.f32 %v656_v44, %v2264_v42  ;;  %v655_v49 = vsel %vm652_vm7, %v605_v29, %v629_v46  ;;  %704 = vrot.lane.b32.xlu1 %v2415_v30, %s2117_s11 }
 0x17b   :  { %v577_v50 = vadd.f32 %v576_v43, %v575_v38  ;;  %v663_v51 = vmul.f32 %v655_v49, %v2268_v45  ;;  %702 = vrot.lane.b32.xlu0 %v2422_v33, %s2117_s11 }
 0x17c   :  { %v585_v53 = vrot.slane %v584_v47, 1  ;;  %v671_v54 = vrot.slane %v670_v48, 4  ;;  %v697_v55 = vpop.permute.xlu1 %696 }
 0x17d   :  { %v578_v57 = vrot.slane %v577_v50, 1  ;;  %v664_v58 = vrot.slane %v663_v51, 4  ;;  %v695_v59 = vpop.permute.xlu0 %694 }
 0x17e   :  { %v586_v60 = vadd.f32 %v585_v53, %v584_v47  ;;  %v672_v61 = vadd.f32 %v671_v54, %v670_v48  ;;  %728 = vrot.lane.b32.xlu1 %v2415_v30, %s2118_s12 }
 0x17f   :  { %v579_v62 = vadd.f32 %v578_v57, %v577_v50  ;;  %v665_v63 = vadd.f32 %v664_v58, %v663_v51  ;;  %726 = vrot.lane.b32.xlu0 %v2422_v33, %s2118_s12  ;;  %v2539_v57 = vadd.f32 %v2302_v7, %v2417_v31 }
 0x180   :  { %v673_v0 = vrot.slane %v672_v61, 2  ;;  %v721_v1 = vpop.permute.xlu1 %720 }
 0x181   :  { %v2502_v2 = vsel %vm320_vm1, %v579_v62, %v586_v60  ;;  %v666_v3 = vrot.slane %v665_v63, 2  ;;  %v746_v4 = vsel %vm742_vm8, %v697_v55, %v721_v1  ;;  %v719_v5 = vpop.permute.xlu0 %718  ;;  %v2543_v60 = vadd.f32 %v2306_v10, %v2419_v32 }
 0x182   :  { %v674_v6 = vadd.f32 %v673_v0, %v672_v61  ;;  %v760_v8 = vmul.f32 %v746_v4, %v2264_v42  ;;  %v745_v9 = vsel %vm742_vm8, %v695_v59, %v719_v5  ;;  %794 = vrot.lane.b32.xlu1 %v2415_v30, %s2119_s13 }
 0x183   :  { %v667_v11 = vadd.f32 %v666_v3, %v665_v63  ;;  %v753_v12 = vmul.f32 %v745_v9, %v2268_v45  ;;  %792 = vrot.lane.b32.xlu0 %v2422_v33, %s2119_s13 }
 0x184   :  { %v675_v14 = vrot.slane %v674_v6, 1  ;;  %v761_v15 = vrot.slane %v760_v8, 4  ;;  %v787_v16 = vpop.permute.xlu1 %786 }
 0x185   :  { %v668_v17 = vrot.slane %v667_v11, 1  ;;  %v754_v18 = vrot.slane %v753_v12, 4  ;;  %v785_v19 = vpop.permute.xlu0 %784 }
 0x186   :  { %v676_v20 = vadd.f32 %v675_v14, %v674_v6  ;;  %v762_v21 = vadd.f32 %v761_v15, %v760_v8  ;;  %818 = vrot.lane.b32.xlu1 %v2415_v30, %s2120_s14 }
 0x187   :  { %v669_v22 = vadd.f32 %v668_v17, %v667_v11  ;;  %v755_v23 = vadd.f32 %v754_v18, %v753_v12  ;;  %816 = vrot.lane.b32.xlu0 %v2422_v33, %s2120_s14 }
 0x188   :  { %v763_v24 = vrot.slane %v762_v21, 2  ;;  %v811_v26 = vpop.permute.xlu1 %810 }
 0x189   :  { %v2520_v28 = vsel %vm320_vm1, %v669_v22, %v676_v20  ;;  %v756_v29 = vrot.slane %v755_v23, 2  ;;  %v836_v35 = vsel %vm832_vm9, %v787_v16, %v811_v26  ;;  %v809_v36 = vpop.permute.xlu0 %808 }
 0x18a   :  { %v764_v37 = vadd.f32 %v763_v24, %v762_v21  ;;  %v850_v38 = vmul.f32 %v836_v35, %v2264_v42  ;;  %v835_v39 = vsel %vm832_vm9, %v785_v19, %v809_v36  ;;  %884 = vrot.lane.b32.xlu1 %v2415_v30, %s2121_s15 }
 0x18b   :  { %v757_v40 = vadd.f32 %v756_v29, %v755_v23  ;;  %v843_v43 = vmul.f32 %v835_v39, %v2268_v45  ;;  %882 = vrot.lane.b32.xlu0 %v2422_v33, %s2121_s15 }
 0x18c   :  { %v765_v44 = vrot.slane %v764_v37, 1  ;;  %v851_v46 = vrot.slane %v850_v38, 4  ;;  %v877_v47 = vpop.permute.xlu1 %876 }
 0x18d   :  { %v758_v48 = vrot.slane %v757_v40, 1  ;;  %v844_v49 = vrot.slane %v843_v43, 4  ;;  %v875_v50 = vpop.permute.xlu0 %874 }
 0x18e   :  { %v766_v51 = vadd.f32 %v765_v44, %v764_v37  ;;  %v852_v53 = vadd.f32 %v851_v46, %v850_v38  ;;  %908 = vrot.lane.b32.xlu1 %v2415_v30, %s2122_s16 }
 0x18f   :  { %v759_v54 = vadd.f32 %v758_v48, %v757_v40  ;;  %v845_v55 = vadd.f32 %v844_v49, %v843_v43  ;;  %906 = vrot.lane.b32.xlu0 %v2422_v33, %s2122_s16 }
 0x190   :  { %v853_v58 = vrot.slane %v852_v53, 2  ;;  %v901_v59 = vpop.permute.xlu1 %900 }
 0x191   :  { %v2546_v61 = vsel %vm320_vm1, %v759_v54, %v766_v51  ;;  %v846_v62 = vrot.slane %v845_v55, 2  ;;  %v926_v63 = vsel %vm922_vm10, %v877_v47, %v901_v59  ;;  %v899_v0 = vpop.permute.xlu0 %898 }
 0x192   :  { %v854_v1 = vadd.f32 %v853_v58, %v852_v53  ;;  %v940_v3 = vmul.f32 %v926_v63, %v2264_v42  ;;  %v925_v7 = vsel %vm922_vm10, %v875_v50, %v899_v0  ;;  %348 = vrot.lane.b32.xlu1 %v2539_v57, %s2109_s1 }
 0x193   :  { %v847_v31 = vadd.f32 %v846_v62, %v845_v55  ;;  %v933_v10 = vmul.f32 %v925_v7, %v2268_v45  ;;  %346 = vrot.lane.b32.xlu0 %v2543_v60, %s2109_s1  ;;  %s1809_s1 = sshll.u32 %s2129_s28, 4  ;;  %s1810_s1 = int_to_ptr.vmem [resolvable:$true] %s1809_s1 }
 0x194   :  { %v855_v32 = vrot.slane %v854_v1, 1  ;;  %v941_v4 = vrot.slane %v940_v3, 4  ;;  %v365_v5 = vpop.permute.xlu1 %364  ;;  %p2065_p1 = scmp.lt.s32.totalorder %s1810_s1, %s1810_s1 }
 0x195   :  { %v848_v6 = vrot.slane %v847_v31, 1  ;;  %v934_v8 = vrot.slane %v933_v10, 4  ;;  %v341_v9 = vpop.permute.xlu0 %340 }
 0x196   :  { %v856_v11 = vadd.f32 %v855_v32, %v854_v1  ;;  %v942_v42 = vadd.f32 %v941_v4, %v940_v3  ;;  %372 = vrot.lane.b32.xlu1 %v2539_v57, %s2110_s2  ;;  %v388_v38 = vsel %vm382_vm4, %v341_v9, %v365_v5 }
 0x197   :  { %v849_v12 = vadd.f32 %v848_v6, %v847_v31  ;;  %v935_v14 = vadd.f32 %v934_v8, %v933_v10  ;;  %370 = vrot.lane.b32.xlu0 %v2543_v60, %s2110_s2  ;;  %v414_v43 = vmul.f32 %v388_v38, %v2280_v52  ;;  %s2060_s2 = scalar_lea.vmem %s1810_s1, 128 }
 0x198   :  { %v943_v45 = vrot.slane %v942_v42, 2  ;;  %v455_v15 = vpop.permute.xlu1 %454  ;;  %p2061_p0 = scmp.ne.s32.totalorder %s1810_s1, %s2060_s2  ;;  %p2066_p2 = scmp.lt.s32.totalorder %s2060_s2, %s2060_s2 }
 0x199   :  { %v2563_v16 = vsel %vm320_vm1, %v849_v12, %v856_v11  ;;  %v936_v17 = vrot.slane %v935_v14, 2  ;;  %v431_v18 = vpop.permute.xlu0 %430  ;;  %v415_v48 = vrot.slane %v414_v43, 4 }
 0x19a   :  { %v944_v19 = vadd.f32 %v943_v45, %v942_v42  ;;  %438 = vrot.lane.b32.xlu1 %v2539_v57, %s2111_s29  ;;  %v478_v44 = vsel %vm472_vm5, %v431_v18, %v455_v15  ;;  %p2067_p3 = por %p2066_p2, %p2065_p1 }
 0x19b   :  { %v937_v20 = vadd.f32 %v936_v17, %v935_v14  ;;  %436 = vrot.lane.b32.xlu0 %v2543_v60, %s2111_s29  ;;  %v504_v49 = vmul.f32 %v478_v44, %v2280_v52  ;;  %v416_v54 = vadd.f32 %v415_v48, %v414_v43 }
 0x19c   :  { %v945_v21 = vrot.slane %v944_v19, 1  ;;  %v545_v22 = vpop.permute.xlu1 %544  ;;  %p2068_p4 = pnand %p2067_p3, %p2061_p0 }
 0x19d   :  { %v938_v23 = vrot.slane %v937_v20, 1  ;;  %v521_v24 = vpop.permute.xlu0 %520  ;;  %v505_v55 = vrot.slane %v504_v49, 4  ;;  %v417_v0 = vrot.slane %v416_v54, 2 }
 0x19e   :  { %v946_v26 = vadd.f32 %v945_v21, %v944_v19  ;;  %462 = vrot.lane.b32.xlu1 %v2539_v57, %s2112_s30  ;;  %v568_v50 = vsel %vm562_vm6, %v521_v24, %v545_v22 }
 0x19f   :  { %v939_v29 = vadd.f32 %v938_v23, %v937_v20  ;;  %460 = vrot.lane.b32.xlu0 %v2543_v60, %s2112_s30  ;;  %v594_v58 = vmul.f32 %v568_v50, %v2280_v52  ;;  %v506_v1 = vadd.f32 %v505_v55, %v504_v49  ;;  %v418_v8 = vadd.f32 %v417_v0, %v416_v54 }
 0x1a0   :  { %v635_v35 = vpop.permute.xlu1 %634 }
 0x1a1   :  { %v2574_v36 = vsel %vm320_vm1, %v939_v29, %v946_v26  ;;  %v611_v37 = vpop.permute.xlu0 %610  ;;  %v595_v3 = vrot.slane %v594_v58, 4  ;;  %v507_v9 = vrot.slane %v506_v1, 2  ;;  %v419_v22 = vrot.slane %v418_v8, 1 }
 0x1a2   :  { %528 = vrot.lane.b32.xlu1 %v2539_v57, %s2113_s7  ;;  %v658_v62 = vsel %vm652_vm7, %v611_v37, %v635_v35 }
 0x1a3   :  { %526 = vrot.lane.b32.xlu0 %v2543_v60, %s2113_s7  ;;  %v684_v10 = vmul.f32 %v658_v62, %v2280_v52  ;;  %v596_v11 = vadd.f32 %v595_v3, %v594_v58  ;;  %v508_v23 = vadd.f32 %v507_v9, %v506_v1  ;;  %v420_v50 = vadd.f32 %v419_v22, %v418_v8 }
 0x1a4   :  { %v725_v39 = vpop.permute.xlu1 %724 }
 0x1a5   :  { %v701_v40 = vpop.permute.xlu0 %700  ;;  %v685_v45 = vrot.slane %v684_v10, 4  ;;  %v597_v24 = vrot.slane %v596_v11, 2  ;;  %v509_v54 = vrot.slane %v508_v23, 1 }
 0x1a6   :  { %552 = vrot.lane.b32.xlu1 %v2539_v57, %s2114_s8  ;;  %v748_v4 = vsel %vm742_vm8, %v701_v40, %v725_v39 }
 0x1a7   :  { %550 = vrot.lane.b32.xlu0 %v2543_v60, %s2114_s8  ;;  %v774_v15 = vmul.f32 %v748_v4, %v2280_v52  ;;  %v686_v38 = vadd.f32 %v685_v45, %v684_v10  ;;  %v598_v55 = vadd.f32 %v597_v24, %v596_v11 }
 0x1a8   :  { %v815_v46 = vpop.permute.xlu1 %814 }
 0x1a9   :  { %v791_v47 = vpop.permute.xlu0 %790  ;;  %v775_v39 = vrot.slane %v774_v15, 4  ;;  %v599_v8 = vrot.slane %v598_v55, 1 }
 0x1aa   :  { %618 = vrot.lane.b32.xlu1 %v2539_v57, %s2115_s9  ;;  %v838_v18 = vsel %vm832_vm9, %v791_v47, %v815_v46 }
 0x1ab   :  { %616 = vrot.lane.b32.xlu0 %v2543_v60, %s2115_s9  ;;  %v864_v40 = vmul.f32 %v838_v18, %v2280_v52 }
 0x1ac   :  { %v905_v51 = vpop.permute.xlu1 %904 }
 0x1ad   :  { %v881_v53 = vpop.permute.xlu0 %880  ;;  %v865_v1 = vrot.slane %v864_v40, 4 }
 0x1ae   :  { %642 = vrot.lane.b32.xlu1 %v2539_v57, %s2116_s10  ;;  %v928_v44 = vsel %vm922_vm10, %v881_v53, %v905_v51  ;;  %v687_v51 = vrot.slane %v686_v38, 2  ;;  %v776_v53 = vadd.f32 %v775_v39, %v774_v15 }
 0x1af   :  { %640 = vrot.lane.b32.xlu0 %v2543_v60, %s2116_s10  ;;  %v954_v3 = vmul.f32 %v928_v44, %v2280_v52  ;;  %v1269_v52 = vld [vmem:[%s3066_s3] sm:$0xff]  ;;  %v866_v15 = vadd.f32 %v865_v1, %v864_v40 }
 0x1b0   :  { %v363_v59 = vpop.permute.xlu1 %362  ;;  %v688_v45 = vadd.f32 %v687_v51, %v686_v38  ;;  %1927 = vmatprep.mubr.msk.f32.mxu1 %vm116_vm0, %v1269_v52 }
 0x1b1   :  { %v339_v63 = vpop.permute.xlu0 %338 }
 0x1b2   :  { %v387_v7 = vsel %vm382_vm4, %v339_v63, %v363_v59  ;;  %708 = vrot.lane.b32.xlu1 %v2539_v57, %s2117_s11  ;;  %v689_v44 = vrot.slane %v688_v45, 1 }
 0x1b3   :  { %v407_v31 = vmul.f32 %v387_v7, %v2284_v56  ;;  %706 = vrot.lane.b32.xlu0 %v2543_v60, %s2117_s11 }
 0x1b4   :  { %v453_v32 = vpop.permute.xlu1 %452 }
 0x1b5   :  { %v408_v5 = vrot.slane %v407_v31, 4  ;;  %v429_v6 = vpop.permute.xlu0 %428 }
 0x1b6   :  { %v477_v42 = vsel %vm472_vm5, %v429_v6, %v453_v32  ;;  %732 = vrot.lane.b32.xlu1 %v2539_v57, %s2118_s12  ;;  %v510_v6 = vadd.f32 %v509_v54, %v508_v23 }
 0x1b7   :  { %v409_v12 = vadd.f32 %v408_v5, %v407_v31  ;;  %v497_v14 = vmul.f32 %v477_v42, %v2284_v56  ;;  %730 = vrot.lane.b32.xlu0 %v2543_v60, %s2118_s12 }
 0x1b8   :  { %v543_v17 = vpop.permute.xlu1 %542 }
 0x1b9   :  { %v410_v19 = vrot.slane %v409_v12, 2  ;;  %v498_v20 = vrot.slane %v497_v14, 4  ;;  %v519_v21 = vpop.permute.xlu0 %518 }
 0x1ba   :  { %v567_v26 = vsel %vm562_vm6, %v519_v21, %v543_v17  ;;  %798 = vrot.lane.b32.xlu1 %v2539_v57, %s2119_s13  ;;  %v955_v17 = vrot.slane %v954_v3, 4 }
 0x1bb   :  { %v411_v29 = vadd.f32 %v410_v19, %v409_v12  ;;  %v499_v35 = vadd.f32 %v498_v20, %v497_v14  ;;  %v587_v37 = vmul.f32 %v567_v26, %v2284_v56  ;;  %796 = vrot.lane.b32.xlu0 %v2543_v60, %s2119_s13  ;;  %v777_v20 = vrot.slane %v776_v53, 2 }
 0x1bc   :  { %v633_v43 = vpop.permute.xlu1 %632  ;;  %v600_v26 = vadd.f32 %v599_v8, %v598_v55 }
 0x1bd   :  { %v412_v46 = vrot.slane %v411_v29, 1  ;;  %v500_v47 = vrot.slane %v499_v35, 2  ;;  %v588_v48 = vrot.slane %v587_v37, 4  ;;  %v609_v49 = vpop.permute.xlu0 %608  ;;  %v778_v54 = vadd.f32 %v777_v20, %v776_v53 }
 0x1be   :  { %v657_v58 = vsel %vm652_vm7, %v609_v49, %v633_v43  ;;  %822 = vrot.lane.b32.xlu1 %v2539_v57, %s2120_s14  ;;  %v2675_v43 = vld [vmem:[%s3067_s4 + $0x8] sm:$0xff] }
 0x1bf   :  { %v413_v59 = vadd.f32 %v412_v46, %v411_v29  ;;  %v501_v62 = vadd.f32 %v500_v47, %v499_v35  ;;  %v589_v63 = vadd.f32 %v588_v48, %v587_v37  ;;  %v677_v0 = vmul.f32 %v657_v58, %v2284_v56  ;;  %820 = vrot.lane.b32.xlu0 %v2543_v60, %s2120_s14 }
 0x1c0   :  { %v723_v7 = vpop.permute.xlu1 %722  ;;  %v867_v46 = vrot.slane %v866_v15, 2  ;;  %v956_v47 = vadd.f32 %v955_v17, %v954_v3  ;;  %v779_v8 = vrot.slane %v778_v54, 1 }
 0x1c1   :  { %v422_v31 = vsel %vm322_vm2, %v2466_v13, %v413_v59  ;;  %v502_v10 = vrot.slane %v501_v62, 1  ;;  %v590_v32 = vrot.slane %v589_v63, 2  ;;  %v678_v4 = vrot.slane %v677_v0, 4  ;;  %v699_v5 = vpop.permute.xlu0 %698 }
 0x1c2   :  { %v2644_v9 = vsel %vm324_vm3, %v422_v31, %v420_v50  ;;  %v747_v11 = vsel %vm742_vm8, %v699_v5, %v723_v7  ;;  %888 = vrot.lane.b32.xlu1 %v2539_v57, %s2121_s15  ;;  %v2680_v50 = vld [vmem:[%s3067_s4] sm:$0xff]  ;;  %v690_v31 = vadd.f32 %v689_v44, %v688_v45  ;;  %v780_v20 = vadd.f32 %v779_v8, %v778_v54 }
 0x1c3   :  { %v964_v13 = vmax.f32 %v2321_v25, %v2644_v9  ;;  %v503_v42 = vadd.f32 %v502_v10, %v501_v62  ;;  %v591_v12 = vadd.f32 %v590_v32, %v589_v63  ;;  %v679_v14 = vadd.f32 %v678_v4, %v677_v0  ;;  %886 = vrot.lane.b32.xlu0 %v2543_v60, %s2121_s15 }
 0x1c4   :  { %v767_v18 = vmul.f32 %v747_v11, %v2284_v56  ;;  %v813_v19 = vpop.permute.xlu1 %812  ;;  %v868_v10 = vadd.f32 %v867_v46, %v866_v15  ;;  %v957_v32 = vrot.slane %v956_v47, 2 }
 0x1c5   :  { %v512_v21 = vsel %vm322_vm2, %v2484_v41, %v503_v42  ;;  %v592_v22 = vrot.slane %v591_v12, 1  ;;  %v680_v23 = vrot.slane %v679_v14, 2  ;;  %v789_v24 = vpop.permute.xlu0 %788 }
 0x1c6   :  { %v2662_v29 = vsel %vm324_vm3, %v512_v21, %v510_v6  ;;  %v768_v35 = vrot.slane %v767_v18, 4  ;;  %v837_v37 = vsel %vm832_vm9, %v789_v24, %v813_v19  ;;  %912 = vrot.lane.b32.xlu1 %v2539_v57, %s2122_s16  ;;  %v2703_v6 = vld [vmem:[%s3067_s4 + $0x10] sm:$0xff]  ;;  %v869_v17 = vrot.slane %v868_v10, 1 }
 0x1c7   :  { %v965_v38 = vmax.f32 %v964_v13, %v2662_v29  ;;  %v593_v39 = vadd.f32 %v592_v22, %v591_v12  ;;  %v681_v40 = vadd.f32 %v680_v23, %v679_v14  ;;  %v857_v41 = vmul.f32 %v837_v37, %v2284_v56  ;;  %910 = vrot.lane.b32.xlu0 %v2543_v60, %s2122_s16 }
 0x1c8   :  { %v769_v48 = vadd.f32 %v768_v35, %v767_v18  ;;  %v903_v49 = vpop.permute.xlu1 %902  ;;  %v958_v18 = vadd.f32 %v957_v32, %v956_v47 }
 0x1c9   :  { %v602_v55 = vsel %vm322_vm2, %v2502_v2, %v593_v39  ;;  %v682_v58 = vrot.slane %v681_v40, 1  ;;  %v858_v59 = vrot.slane %v857_v41, 4  ;;  %v879_v62 = vpop.permute.xlu0 %878  ;;  %v2696_v2 = vld [vmem:[%s3067_s4 + $0x18] sm:$0xff]  ;;  %v870_v39 = vadd.f32 %v869_v17, %v868_v10 }
 0x1ca   :  { %v2685_v63 = vsel %vm324_vm3, %v602_v55, %v600_v26  ;;  %v770_v0 = vrot.slane %v769_v48, 2  ;;  %v927_v51 = vsel %vm922_vm10, %v879_v62, %v903_v49  ;;  %1290 = vperm.xlu1 %2019, %v2675_v43   ;;  %v2123_v26 = vmov 3  }
 0x1cb   :  { %v966_v1 = vmax.f32 %v965_v38, %v2685_v63  ;;  %v683_v3 = vadd.f32 %v682_v58, %v681_v40  ;;  %v859_v7 = vadd.f32 %v858_v59, %v857_v41  ;;  %v947_v53 = vmul.f32 %v927_v51, %v2284_v56  ;;  %1285 = vperm.xlu0 %2018, %v2680_v50  }
 0x1cc   :  { %v771_v4 = vadd.f32 %v770_v0, %v769_v48  ;;  %v2698_v5 = vpop.permute.xlu1 %344  ;;  %v959_v40 = vrot.slane %v958_v18, 1  ;;  %v2124_v55 = vmov 4  }
 0x1cd   :  { %v692_v56 = vsel %vm322_vm2, %v2520_v28, %v683_v3  ;;  %v860_v11 = vrot.slane %v859_v7, 2  ;;  %v948_v52 = vrot.slane %v947_v53, 4  ;;  %v2707_v13 = vpop.permute.xlu0 %342 }
 0x1ce   :  { %v2710_v42 = vsel %vm324_vm3, %v692_v56, %v690_v31  ;;  %v772_v12 = vrot.slane %v771_v4, 1  ;;  %1300 = vperm.xlu1 %2019, %v2696_v2   ;;  %v960_v58 = vadd.f32 %v959_v40, %v958_v18 }
 0x1cf   :  { %v967_v14 = vmax.f32 %v966_v1, %v2710_v42  ;;  %v861_v45 = vadd.f32 %v860_v11, %v859_v7  ;;  %v949_v15 = vadd.f32 %v948_v52, %v947_v53  ;;  %1295 = vperm.xlu0 %2018, %v2703_v6  }
 0x1d0   :  { %v773_v19 = vadd.f32 %v772_v12, %v771_v4  ;;  %v2715_v28 = vpop.permute.xlu1 %368 }
 0x1d1   :  { %v862_v21 = vrot.slane %v861_v45, 1  ;;  %v950_v22 = vrot.slane %v949_v15, 2  ;;  %v2717_v23 = vpop.permute.xlu0 %366 }
 0x1d2   :  { %v782_v24 = vsel %vm322_vm2, %v2546_v61, %v773_v19  ;;  %2021 = vset.pattern.permute.xlu1 %v2123_v26 }
 0x1d3   :  { %v783_v35 = vsel %vm324_vm3, %v782_v24, %v780_v20  ;;  %v863_v37 = vadd.f32 %v862_v21, %v861_v45  ;;  %v951_v38 = vadd.f32 %v950_v22, %v949_v15  ;;  %1444 = vperm.xlu1 %2021, %v2675_v43   ;;  %2020 = vset.pattern.permute.xlu0 %v2123_v26 }
 0x1d4   :  { %v968_v41 = vmax.f32 %v967_v14, %v783_v35  ;;  %v2723_v44 = vpop.permute.xlu1 %434  ;;  %1440 = vperm.xlu0 %2020, %v2680_v50  }
 0x1d5   :  { %v872_v46 = vsel %vm322_vm2, %v2563_v16, %v863_v37  ;;  %v952_v61 = vrot.slane %v951_v38, 1  ;;  %v2728_v47 = vpop.permute.xlu0 %432 }
 0x1d6   :  { %v873_v48 = vsel %vm324_vm3, %v872_v46, %v870_v39 }
 0x1d7   :  { %v969_v49 = vmax.f32 %v968_v41, %v873_v48  ;;  %v953_v54 = vadd.f32 %v952_v61, %v951_v38  ;;  %2022 = vset.pattern.permute.xlu1 %v2124_v55 }
 0x1d8   :  { %v2731_v59 = vpop.permute.xlu1 %458  ;;  %1460 = vperm.xlu1 %2022, %v2680_v50   ;;  %2023 = vset.pattern.permute.xlu0 %v2124_v55 }
 0x1d9   :  { %v962_v62 = vsel %vm322_vm2, %v2574_v36, %v953_v54  ;;  %v2736_v0 = vpop.permute.xlu0 %456  ;;  %1464 = vperm.xlu0 %2023, %v2675_v43  }
 0x1da   :  { %v963_v16 = vsel %vm324_vm3, %v962_v62, %v960_v58 }
 0x1db   :  { %v970_v51 = vmax.f32 %v969_v49, %v963_v16 }
 0x1dc   :  { %v2740_v1 = vpop.permute.xlu1 %524  ;;  %2024 = vset.pattern.permute.xlu1 %v2123_v26 }
 0x1dd   :  { %v977_v3 = vsub.f32 %v2662_v29, %v970_v51  ;;  %v980_v7 = vsub.f32 %v2685_v63, %v970_v51  ;;  %v983_v53 = vsub.f32 %v2710_v42, %v970_v51  ;;  %v986_v31 = vsub.f32 %v783_v35, %v970_v51  ;;  %v2745_v10 = vpop.permute.xlu0 %522  ;;  %1448 = vperm.xlu1 %2024, %v2703_v6  }
 0x1de   :  { %v989_v36 = vsub.f32 %v873_v48, %v970_v51  ;;  %v992_v32 = vsub.f32 %v963_v16, %v970_v51  ;;  %v971_v4 = vsub.f32 %v2321_v25, %v970_v51  ;;  %v974_v8 = vsub.f32 %v2644_v9, %v970_v51  ;;  %1468 = vperm.xlu0 %2023, %v2703_v6  }
 0x1df   :  { %v978_v12 = vmul.f32 1.442695, %v977_v3  ;;  %v981_v25 = vmul.f32 1.442695, %v980_v7  ;;  %v984_v45 = vmul.f32 1.442695, %v983_v53 }
 0x1e0   :  { %v2751_v56 = vpop.permute.xlu1 %548  ;;  %v972_v63 = vmul.f32 1.442695, %v971_v4  ;;  %v975_v11 = vmul.f32 1.442695, %v974_v8  ;;  %v987_v15 = vmul.f32 1.442695, %v986_v31 }
 0x1e1   :  { %v2753_v29 = vpop.permute.xlu0 %546  ;;  %1452 = vperm.xlu1 %2024, %v2696_v2   ;;  %v990_v19 = vmul.f32 1.442695, %v989_v36  ;;  %v993_v20 = vmul.f32 1.442695, %v992_v32  ;;  %v1082_v32 = vshrl.u32 %v278_v27, 7  ;;  %v389_v27 = vsel %vm382_vm4, %v2707_v13, %v2717_v23 }
 0x1e2   :  { %2034 = vpow2.f32 %v972_v63  ;;  %v569_v13 = vsel %vm562_vm6, %v2745_v10, %v2753_v29 }
 0x1e3   :  { %2036 = vpow2.f32 %v975_v11  ;;  %v2762_v63 = vsub.s32 1, %v1082_v32  ;;  %v2764_v11 = vsub.s32 0, %v1082_v32 }
 0x1e4   :  { %v2756_v52 = vpop.permute.xlu1 %614  ;;  %2038 = vpow2.f32 %v978_v12  ;;  %v2766_v12 = vsub.s32 3, %v1082_v32 }
 0x1e5   :  { %v2758_v42 = vpop.permute.xlu0 %612  ;;  %2025 = vset.pattern.permute.xlu1 %v2124_v55  ;;  %2040 = vpow2.f32 %v981_v25  ;;  %v2768_v25 = vsub.s32 2, %v1082_v32 }
 0x1e6   :  { %1472 = vperm.xlu1 %2025, %v2696_v2   ;;  %2042 = vpow2.f32 %v984_v45  ;;  %v390_v45 = vsel %vm382_vm4, %v2698_v5, %v2715_v28  ;;  %v570_v5 = vsel %vm562_vm6, %v2740_v1, %v2751_v56 }
 0x1e7   :  { %2044 = vpow2.f32 %v987_v15  ;;  %v480_v15 = vsel %vm472_vm5, %v2723_v44, %v2731_v59 }
 0x1e8   :  { %v639_v9 = vpop.permute.xlu1 %638  ;;  %2046 = vpow2.f32 %v990_v19  ;;  %v479_v19 = vsel %vm472_vm5, %v2728_v47, %v2736_v0 }
 0x1e9   :  { %v637_v14 = vpop.permute.xlu0 %636  ;;  %2048 = vpow2.f32 %v993_v20  ;;  %v660_v28 = vsel %vm652_vm7, %v2756_v52, %v639_v9 }
 0x1ea   :  { %v659_v23 = vsel %vm652_vm7, %v2758_v42, %v637_v14 }
 0x1ec   :  { %v705_v17 = vpop.permute.xlu1 %704  ;;  %v2035_v22 = vpop.eup %2034 }
 0x1ed   :  { %v703_v18 = vpop.permute.xlu0 %702  ;;  %v2037_v26 = vpop.eup %2036 }
 0x1ee   :  { %v995_v35 = vadd.f32 %v2037_v26, %v2035_v22  ;;  %v2039_v37 = vpop.eup %2038 }
 0x1ef   :  { %v2041_v41 = vpop.eup %2040 }
 0x1f0   :  { %v729_v21 = vpop.permute.xlu1 %728  ;;  %v996_v39 = vadd.f32 %v2039_v37, %v995_v35  ;;  %v2043_v61 = vpop.eup %2042 }
 0x1f1   :  { %v727_v24 = vpop.permute.xlu0 %726  ;;  %v2045_v55 = vpop.eup %2044  ;;  %v750_v47 = vsel %vm742_vm8, %v705_v17, %v729_v21 }
 0x1f2   :  { %v997_v46 = vadd.f32 %v2041_v41, %v996_v39  ;;  %v2047_v62 = vpop.eup %2046  ;;  %v749_v59 = vsel %vm742_vm8, %v703_v18, %v727_v24 }
 0x1f3   :  { %v2049_v7 = vpop.eup %2048 }
 0x1f4   :  { %v795_v38 = vpop.permute.xlu1 %794  ;;  %v998_v49 = vadd.f32 %v2043_v61, %v997_v46 }
 0x1f5   :  { %v793_v40 = vpop.permute.xlu0 %792 }
 0x1f6   :  { %v999_v58 = vadd.f32 %v2045_v55, %v998_v49 }
 0x1f8   :  { %v819_v48 = vpop.permute.xlu1 %818  ;;  %v1000_v51 = vadd.f32 %v2047_v62, %v999_v58 }
 0x1f9   :  { %v817_v54 = vpop.permute.xlu0 %816  ;;  %v840_v0 = vsel %vm832_vm9, %v795_v38, %v819_v48 }
 0x1fa   :  { %v1001_v53 = vadd.f32 %v2049_v7, %v1000_v51  ;;  %v839_v1 = vsel %vm832_vm9, %v793_v40, %v817_v54 }
 0x1fc   :  { %v885_v16 = vpop.permute.xlu1 %884  ;;  %2050 = vrcp.f32 %v1001_v53 }
 0x1fd   :  { %v883_v3 = vpop.permute.xlu0 %882 }
 0x200   :  { %v909_v31 = vpop.permute.xlu1 %908 }
 0x201   :  { %v907_v36 = vpop.permute.xlu0 %906  ;;  %v930_v56 = vsel %vm922_vm10, %v885_v16, %v909_v31 }
 0x202   :  { %v929_v29 = vsel %vm922_vm10, %v883_v3, %v907_v36 }
 0x204   :  { %v349_v4 = vpop.permute.xlu1 %348 }
 0x205   :  { %v347_v8 = vpop.permute.xlu0 %346 }
 0x206   :  { %v2051_v10 = vpop.eup %2050 }
 0x207   :  { %v2818_v9 = vmul.f32 %v2051_v10, %v2035_v22  ;;  %v2820_v14 = vmul.f32 %v2051_v10, %v2037_v26  ;;  %v2822_v17 = vmul.f32 %v2051_v10, %v2039_v37  ;;  %v2824_v18 = vmul.f32 %v2051_v10, %v2041_v41 }
 0x208   :  { %v373_v20 = vpop.permute.xlu1 %372  ;;  %v2828_v24 = vmul.f32 %v2051_v10, %v2043_v61  ;;  %v2830_v35 = vmul.f32 %v2051_v10, %v2045_v55  ;;  %v2832_v38 = vmul.f32 %v2051_v10, %v2047_v62  ;;  %v2834_v39 = vmul.f32 %v2051_v10, %v2049_v7 }
 0x209   :  { %v371_v44 = vpop.permute.xlu0 %370  ;;  %v392_v52 = vsel %vm382_vm4, %v349_v4, %v373_v20  ;;  %v1131_v22 = vrot.slane %v2818_v9, %v2762_v63  ;;  %v1136_v26 = vrot.slane %v2820_v14, %v2762_v63  ;;  %v1084_v37 = vrot.slane %v2818_v9, %v2764_v11 }
 0x20a   :  { %v2816_v42 = vsel %vm382_vm4, %v347_v8, %v371_v44  ;;  %v1089_v41 = vrot.slane %v2820_v14, %v2764_v11  ;;  %v1142_v46 = vrot.slane %v2822_v17, %v2762_v63  ;;  %v1095_v61 = vrot.slane %v2822_v17, %v2764_v11 }
 0x20b   :  { %v1148_v48 = vrot.slane %v2824_v18, %v2762_v63  ;;  %v1101_v49 = vrot.slane %v2824_v18, %v2764_v11  ;;  %v1132_v54 = vmul.f32 %v1131_v22, %v2415_v30  ;;  %v1137_v55 = vmul.f32 %v1136_v26, %v390_v45 }
 0x20c   :  { %v2826_v21 = vpop.permute.xlu1 %438  ;;  %v1085_v58 = vmul.f32 %v1084_v37, %v2422_v33  ;;  %v1090_v62 = vmul.f32 %v1089_v41, %v389_v27  ;;  %v1143_v51 = vmul.f32 %v1142_v46, %v480_v15  ;;  %v1096_v3 = vmul.f32 %v1095_v61, %v479_v19 }
 0x20d   :  { %v437_v40 = vpop.permute.xlu0 %436  ;;  %v1149_v7 = vmul.f32 %v1148_v48, %v570_v5  ;;  %v1102_v53 = vmul.f32 %v1101_v49, %v569_v13  ;;  %v1138_v36 = vadd.f32 %v1137_v55, %v1132_v54  ;;  %v1154_v4 = vrot.slane %v2828_v24, %v2762_v63 }
 0x20e   :  { %v1091_v32 = vadd.f32 %v1090_v62, %v1085_v58  ;;  %v1107_v8 = vrot.slane %v2828_v24, %v2764_v11  ;;  %v1160_v30 = vrot.slane %v2830_v35, %v2762_v63  ;;  %v1113_v33 = vrot.slane %v2830_v35, %v2764_v11 }
 0x20f   :  { %v1166_v45 = vrot.slane %v2832_v38, %v2762_v63  ;;  %v1119_v27 = vrot.slane %v2832_v38, %v2764_v11  ;;  %v1144_v15 = vadd.f32 %v1143_v51, %v1138_v36  ;;  %v1155_v20 = vmul.f32 %v1154_v4, %v660_v28 }
 0x210   :  { %v463_v16 = vpop.permute.xlu1 %462  ;;  %v1097_v19 = vadd.f32 %v1096_v3, %v1091_v32  ;;  %v1108_v5 = vmul.f32 %v1107_v8, %v659_v23  ;;  %v1161_v44 = vmul.f32 %v1160_v30, %v750_v47  ;;  %v1114_v10 = vmul.f32 %v1113_v33, %v749_v59 }
 0x211   :  { %v461_v31 = vpop.permute.xlu0 %460  ;;  %v1167_v22 = vmul.f32 %v1166_v45, %v840_v0  ;;  %v1120_v26 = vmul.f32 %v1119_v27, %v839_v1  ;;  %v1150_v41 = vadd.f32 %v1149_v7, %v1144_v15  ;;  %v1172_v61 = vrot.slane %v2834_v39, %v2762_v63 }
 0x212   :  { %v1103_v46 = vadd.f32 %v1102_v53, %v1097_v19  ;;  %v1125_v48 = vrot.slane %v2834_v39, %v2764_v11  ;;  %v1225_v49 = vrot.slane %v2818_v9, %v2766_v12  ;;  %v1230_v28 = vrot.slane %v2820_v14, %v2766_v12 }
 0x213   :  { %v1178_v23 = vrot.slane %v2818_v9, %v2768_v25  ;;  %v1183_v47 = vrot.slane %v2820_v14, %v2768_v25  ;;  %v1156_v59 = vadd.f32 %v1155_v20, %v1150_v41  ;;  %v1173_v1 = vmul.f32 %v1172_v61, %v930_v56 }
 0x214   :  { %v529_v13 = vpop.permute.xlu1 %528  ;;  %v1109_v0 = vadd.f32 %v1108_v5, %v1103_v46  ;;  %v1126_v54 = vmul.f32 %v1125_v48, %v929_v29  ;;  %v1226_v55 = vmul.f32 %v1225_v49, %v2539_v57  ;;  %v1231_v11 = vmul.f32 %v1230_v28, %v392_v52 }
 0x215   :  { %v527_v37 = vpop.permute.xlu0 %526  ;;  %v1179_v58 = vmul.f32 %v1178_v23, %v2543_v60  ;;  %v1184_v62 = vmul.f32 %v1183_v47, %v2816_v42  ;;  %v1162_v3 = vadd.f32 %v1161_v44, %v1156_v59  ;;  %v482_v53 = vsel %vm472_vm5, %v2826_v21, %v463_v16 }
 0x216   :  { %v1115_v7 = vadd.f32 %v1114_v10, %v1109_v0  ;;  %v1236_v36 = vrot.slane %v2822_v17, %v2766_v12  ;;  %v1232_v56 = vadd.f32 %v1231_v11, %v1226_v55  ;;  %v481_v57 = vsel %vm472_vm5, %v437_v40, %v461_v31 }
 0x217   :  { %v1185_v29 = vadd.f32 %v1184_v62, %v1179_v58  ;;  %v1189_v60 = vrot.slane %v2822_v17, %v2768_v25  ;;  %v1168_v52 = vadd.f32 %v1167_v22, %v1162_v3  ;;  %v1242_v21 = vrot.slane %v2824_v18, %v2766_v12 }
 0x218   :  { %v553_v63 = vpop.permute.xlu1 %552  ;;  %v1121_v42 = vadd.f32 %v1120_v26, %v1115_v7  ;;  %v1237_v32 = vmul.f32 %v1236_v36, %v482_v53  ;;  %v1195_v40 = vrot.slane %v2824_v18, %v2768_v25  ;;  %v1248_v44 = vrot.slane %v2828_v24, %v2766_v12 }
 0x219   :  { %v551_v51 = vpop.permute.xlu0 %550  ;;  %v572_v4 = vsel %vm562_vm6, %v529_v13, %v553_v63  ;;  %v1190_v30 = vmul.f32 %v1189_v60, %v481_v57  ;;  %v1174_v27 = vadd.f32 %v1173_v1, %v1168_v52  ;;  %v1201_v41 = vrot.slane %v2828_v24, %v2768_v25 }
 0x21a   :  { %v571_v16 = vsel %vm562_vm6, %v527_v37, %v551_v51  ;;  %v1238_v33 = vadd.f32 %v1237_v32, %v1232_v56  ;;  %v1127_v45 = vadd.f32 %v1126_v54, %v1121_v42  ;;  %v1243_v19 = vmul.f32 %v1242_v21, %v572_v4 }
 0x21b   :  { %v1191_v15 = vadd.f32 %v1190_v30, %v1185_v29  ;;  %v1196_v20 = vmul.f32 %v1195_v40, %v571_v16  ;;  %v1254_v48 = vrot.slane %v2830_v35, %v2766_v12  ;;  %v1207_v49 = vrot.slane %v2830_v35, %v2768_v25 }
 0x21c   :  { %v619_v8 = vpop.permute.xlu1 %618  ;;  %v1969_v5 = vpack.c.bf16 %v1174_v27, %v1127_v45  ;;  %v1244_v10 = vadd.f32 %v1243_v19, %v1238_v33  ;;  %v1013_v23 = vsel %vm1012_vm11, %v2818_v9, 0.0  ;;  %v1020_v47 = vsel %vm1012_vm11, %v2820_v14, 0.0 }
 0x21d   :  { %v617_v31 = vpop.permute.xlu0 %616  ;;  %v1197_v22 = vadd.f32 %v1196_v20, %v1191_v15  ;;  %v1027_v59 = vsel %vm1012_vm11, %v2822_v17, 0.0  ;;  %v1014_v54 = vrot.slane %v1013_v23, 4  ;;  %v1021_v63 = vrot.slane %v1020_v47, 4 }
 0x21e   :  { %1970 = vmatprep.subr.bf16.mxu1 %v1969_v5  ;;  %v1028_v55 = vrot.slane %v1027_v59, 4  ;;  %v1034_v62 = vsel %vm1012_vm11, %v2824_v18, 0.0  ;;  %v1041_v51 = vsel %vm1012_vm11, %v2828_v24, 0.0  ;;  %v1048_v9 = vsel %vm1012_vm11, %v2830_v35, 0.0 }
 0x21f   :  { %1972 = vmatpush3.bf16.msra.mxu1 %v1969_v5  ;;  %v1015_v14 = vadd.f32 %v1014_v54, %v1013_v23  ;;  %v1022_v3 = vadd.f32 %v1021_v63, %v1020_v47  ;;  %v1035_v17 = vrot.slane %v1034_v62, 4  ;;  %v1042_v53 = vrot.slane %v1041_v51, 4 }
 0x220   :  { %v643_v13 = vpop.permute.xlu1 %642  ;;  %v1029_v7 = vadd.f32 %v1028_v55, %v1027_v59  ;;  %v1049_v36 = vrot.slane %v1048_v9, 4  ;;  %v1055_v56 = vsel %vm1012_vm11, %v2832_v38, 0.0  ;;  %v1062_v29 = vsel %vm1012_vm11, %v2834_v39, 0.0 }
 0x221   :  { %v662_v26 = vsel %vm652_vm7, %v619_v8, %v643_v13  ;;  %v641_v37 = vpop.permute.xlu0 %640  ;;  %v1016_v18 = vrot.slane %v1015_v14, 2  ;;  %v1023_v60 = vrot.slane %v1022_v3, 2  ;;  %v1036_v24 = vadd.f32 %v1035_v17, %v1034_v62 }
 0x222   :  { %v1249_v46 = vmul.f32 %v1248_v44, %v662_v26  ;;  %v661_v61 = vsel %vm652_vm7, %v617_v31, %v641_v37  ;;  %v1030_v52 = vrot.slane %v1029_v7, 2  ;;  %v1043_v32 = vadd.f32 %v1042_v53, %v1041_v51 }
 0x223   :  { %v1202_v28 = vmul.f32 %v1201_v41, %v661_v61  ;;  %v1050_v4 = vadd.f32 %v1049_v36, %v1048_v9  ;;  %v1056_v8 = vrot.slane %v1055_v56, 4  ;;  %v1017_v16 = vadd.f32 %v1016_v18, %v1015_v14 }
 0x224   :  { %v1250_v0 = vadd.f32 %v1249_v46, %v1244_v10  ;;  %v709_v1 = vpop.permute.xlu1 %708  ;;  %v1024_v40 = vadd.f32 %v1023_v60, %v1022_v3  ;;  %v1031_v33 = vadd.f32 %v1030_v52, %v1029_v7  ;;  %v1037_v45 = vrot.slane %v1036_v24, 2 }
 0x225   :  { %v1203_v11 = vadd.f32 %v1202_v28, %v1197_v22  ;;  %v707_v58 = vpop.permute.xlu0 %706  ;;  %v1044_v27 = vrot.slane %v1043_v32, 2  ;;  %v1018_v20 = vrot.slane %v1017_v16, 1  ;;  %v1051_v13 = vrot.slane %v1050_v4, 2 }
 0x226   :  { %v1025_v5 = vrot.slane %v1024_v40, 1  ;;  %v1032_v22 = vrot.slane %v1031_v33, 1  ;;  %v1038_v26 = vadd.f32 %v1037_v45, %v1036_v24  ;;  %v1063_v47 = vrot.slane %v1062_v29, 4 }
 0x227   :  { %v1045_v37 = vadd.f32 %v1044_v27, %v1043_v32  ;;  %v1019_v41 = vadd.f32 %v1018_v20, %v1017_v16  ;;  %v1052_v61 = vadd.f32 %v1051_v13, %v1050_v4 }
 0x228   :  { %v733_v57 = vpop.permute.xlu1 %732  ;;  %v1026_v46 = vadd.f32 %v1025_v5, %v1024_v40  ;;  %v1033_v28 = vadd.f32 %v1032_v22, %v1031_v33  ;;  %v1039_v23 = vrot.slane %v1038_v26, 1  ;;  %v1064_v62 = vadd.f32 %v1063_v47, %v1062_v29 }
 0x229   :  { %v752_v35 = vsel %vm742_vm8, %v709_v1, %v733_v57  ;;  %v731_v42 = vpop.permute.xlu0 %730  ;;  %v1053_v1 = vrot.slane %v1052_v61, 1 }
 0x22a   :  { %v1255_v30 = vmul.f32 %v1254_v48, %v752_v35  ;;  %v751_v21 = vsel %vm742_vm8, %v707_v58, %v731_v42  ;;  %v1057_v48 = vadd.f32 %v1056_v8, %v1055_v56  ;;  %v1069_v63 = vsel %vm320_vm1, %v1019_v41, %v1026_v46 }
 0x22b   :  { %v1208_v31 = vmul.f32 %v1207_v49, %v751_v21  ;;  %v1046_v49 = vrot.slane %v1045_v37, 1  ;;  %v1213_v58 = vrot.slane %v2832_v38, %v2768_v25  ;;  %v1040_v14 = vadd.f32 %v1039_v23, %v1038_v26 }
 0x22c   :  { %v1256_v15 = vadd.f32 %v1255_v30, %v1250_v0  ;;  %v799_v19 = vpop.permute.xlu1 %798  ;;  %v1260_v0 = vrot.slane %v2832_v38, %v2766_v12  ;;  %v1058_v54 = vrot.slane %v1057_v48, 2  ;;  %v1065_v53 = vrot.slane %v1064_v62, 2 }
 0x22d   :  { %v1209_v44 = vadd.f32 %v1208_v31, %v1203_v11  ;;  %v797_v10 = vpop.permute.xlu0 %796  ;;  %v1047_v17 = vadd.f32 %v1046_v49, %v1045_v37  ;;  %v1070_v36 = vsel %vm322_vm2, %v1069_v63, %v1033_v28  ;;  %v1054_v18 = vadd.f32 %v1053_v1, %v1052_v61  ;;  %v2057_v49 = vld [vmem:[%s3063_s0] sm:$0xff] }
 0x22e   :  { %v1059_v3 = vadd.f32 %v1058_v54, %v1057_v48  ;;  %v1071_v52 = vsel %vm324_vm3, %v1070_v36, %v1040_v14  ;;  %v1066_v24 = vadd.f32 %v1065_v53, %v1064_v62  ;;  %v1266_v30 = vrot.slane %v2834_v39, %v2766_v12  ;;  %v2056_v48 = vld [vmem:[%s3063_s0 + $0x8] sm:$0xff]  ;;  %v2059_v62 = vld [vmem:[%s3063_s0 + $0x18] sm:$0xff] }
 0x22f   :  { %v1072_v35 = vsel %vm1012_vm11, %v1071_v52, %v1047_v17  ;;  %v1219_v31 = vrot.slane %v2834_v39, %v2768_v25  ;;  %v1271_v25 = vld [vmem:[%s3066_s3 + $0x10] sm:$0xff]  ;;  %v1833_v39 = vld [vmem:[%s3066_s3 + $0x20] sm:$0xff] }
 0x230   :  { %v823_v59 = vpop.permute.xlu1 %822  ;;  %v1060_v60 = vrot.slane %v1059_v3, 1  ;;  %v1074_v32 = vsel %vm1073_vm12, %v1072_v35, %v1054_v18  ;;  %v1067_v4 = vrot.slane %v1066_v24, 1 }
 0x231   :  { %v842_v55 = vsel %vm832_vm9, %v799_v19, %v823_v59  ;;  %v821_v11 = vpop.permute.xlu0 %820 }
 0x232   :  { %v1261_v51 = vmul.f32 %v1260_v0, %v842_v55  ;;  %v841_v9 = vsel %vm832_vm9, %v797_v10, %v821_v11  ;;  %v1061_v42 = vadd.f32 %v1060_v60, %v1059_v3  ;;  %v1068_v33 = vadd.f32 %v1067_v4, %v1066_v24  ;;  %v2058_v11 = vld [vmem:[%s3063_s0 + $0x10] sm:$0xff] }
 0x233   :  { %v1214_v7 = vmul.f32 %v1213_v58, %v841_v9  ;;  %v2125_v10 = vmov 1  }
 0x234   :  { %v1262_v56 = vadd.f32 %v1261_v51, %v1256_v15  ;;  %v889_v57 = vpop.permute.xlu1 %888  ;;  %v1076_v21 = vsel %vm1075_vm13, %v1074_v32, %v1061_v42  ;;  %2027 = vset.pattern.permute.xlu1 %v2125_v10  ;;  %2026 = vset.pattern.permute.xlu0 %v2125_v10 }
 0x235   :  { %v1215_v38 = vadd.f32 %v1214_v7, %v1209_v44  ;;  %v887_v29 = vpop.permute.xlu0 %886  ;;  %v1078_v19 = vsel %vm1077_vm14, %v1076_v21, %v1068_v33  ;;  %v1270_v44 = vld [vmem:[%s3066_s3 + $0x8] sm:$0xff]  ;;  %1484 = vperm.xlu1 %2027, %v2675_v43   ;;  %1480 = vperm.xlu0 %2026, %v2680_v50  }
 0x236   :  { %v1079_v5 = vmul.f32 0.25, %v1078_v19 }
 0x238   :  { %v913_v8 = vpop.permute.xlu1 %912  ;;  %1080 = vst [vmem:[#allocation4] sm:$0xff] %v1079_v5 }
 0x239   :  { %v932_v16 = vsel %vm922_vm10, %v889_v57, %v913_v8  ;;  %v911_v40 = vpop.permute.xlu0 %910  ;;  %1488 = vperm.xlu1 %2027, %v2703_v6   ;;  %1492 = vperm.xlu0 %2026, %v2696_v2  }
 0x23a   :  { %v1267_v45 = vmul.f32 %v1266_v30, %v932_v16  ;;  %v931_v27 = vsel %vm922_vm10, %v887_v29, %v911_v40 }
 0x23b   :  { %v1220_v15 = vmul.f32 %v1219_v31, %v931_v27 }
 0x23c   :  { %v1268_v20 = vadd.f32 %v1267_v45, %v1262_v56 }
 0x23d   :  { %v1221_v13 = vadd.f32 %v1220_v15, %v1215_v38 }
 0x23f   :  { %v1973_v12 = vpack.c.bf16 %v1268_v20, %v1221_v13 }
 0x241   :  { %1974 = vmatprep.subr.bf16.mxu1 %v1973_v12 }
 0x242   :  { %1976 = vmatpush3.bf16.msra.mxu1 %v1973_v12 }
 0x245   :  { %1928 = vmatmul.mubr.msk.f32.vlgmr.msra.gmra.mrb[0].mxu1 %vm116_vm0, %v1270_v44 }
 0x246   :  { %1930 = vmatprep.mubr.msk.f32.mxu1 %vm116_vm0, %v1271_v25 }
 0x249   :  { %1931 = vmatmul.mubr.msk.f32.gmra.mrb[2].mxu1 %vm116_vm0, %v1272_v34  ;;  %v1291_v22 = vpop.permute.xlu1 %1290 }
 0x24a   :  { %1941 = vmatprep.mubr.msk.f32.mxu1 %vm116_vm0, %v1833_v39  ;;  %v1286_v26 = vpop.permute.xlu0 %1285 }
 0x24d   :  { %v1301_v23 = vpop.permute.xlu1 %1300 }
 0x24e   :  { %v1296_v0 = vpop.permute.xlu0 %1295 }
 0x252   :  { %v1445_v16 = vpop.permute.xlu1 %1444 }
 0x253   :  { %v1441_v5 = vpop.permute.xlu0 %1440 }
 0x257   :  { %v1461_v27 = vpop.permute.xlu1 %1460 }
 0x258   :  { %v1465_v12 = vpop.permute.xlu0 %1464 }
 0x25c   :  { %v1449_v20 = vpop.permute.xlu1 %1448 }
 0x260   :  { %v1453_v13 = vpop.permute.xlu1 %1452 }
 0x318   :  { %v1929_v37 = vpop.f32.mrb[0].mxu1 }
 0x319   :  { %v1387_v41 = vadd.f32 %v1929_v37, %v1291_v22  ;;  %v1381_v46 = vpop.f32.mrb[1].mxu1  ;;  %v1473_v22 = vpop.permute.xlu1 %1472 }
 0x31a   :  { %v1382_v61 = vadd.f32 %v1381_v46, %v1286_v26  ;;  %v1469_v26 = vpop.permute.xlu0 %1468 }
 0x31b   :  { %v1401_v28 = vadd.f32 %v2056_v48, %v1387_v41 }
 0x31c   :  { %v1400_v47 = vadd.f32 %v2057_v49, %v1382_v61  ;;  %v1932_v59 = vpop.f32.mrb[2].mxu1 }
 0x31d   :  { %v1391_v1 = vpop.f32.mrb[3].mxu1  ;;  %v1397_v63 = vadd.f32 %v1932_v59, %v1301_v23 }
 0x31e   :  { %v1404_v54 = vadd.f32 %v1401_v28, %v1400_v47  ;;  %v1392_v55 = vadd.f32 %v1391_v1, %v1296_v0  ;;  %v1834_v0 = vld [vmem:[%s3066_s3 + $0x28] sm:$0xff]  ;;  %v1835_v1 = vld [vmem:[%s3066_s3 + $0x30] sm:$0xff] }
 0x31f   :  { %v1403_v51 = vadd.f32 %v2059_v62, %v1397_v63  ;;  %v1837_v63 = vld [vmem:[%s3066_s3 + $0x40] sm:$0xff]  ;;  %v1481_v62 = vpop.permute.xlu0 %1480 }
 0x320   :  { %v1402_v58 = vadd.f32 %v2058_v11, %v1392_v55  ;;  %v2126_v55 = vmov 2   ;;  %v2127_v11 = vmov 5  }
 0x321   :  { %2028 = vset.pattern.permute.xlu1 %v2126_v55  ;;  %2029 = vset.pattern.permute.xlu0 %v2126_v55 }
 0x322   :  { %v1405_v9 = vadd.f32 %v1404_v54, %v1402_v58  ;;  %v1836_v54 = vld [vmem:[%s3066_s3 + $0x38] sm:$0xff]  ;;  %1597 = vperm.xlu1 %2028, %v2680_v50   ;;  %1601 = vperm.xlu0 %2029, %v2675_v43  }
 0x324   :  { %v1406_v14 = vadd.f32 %v1405_v9, %v1403_v51 }
 0x326   :  { %v1407_v3 = vrot.slane %v1406_v14, 4  ;;  %1605 = vperm.xlu1 %2028, %v2703_v6   ;;  %2030 = vset.pattern.permute.xlu0 %v2127_v11 }
 0x327   :  { %1748 = vperm.xlu0 %2030, %v2680_v50  }
 0x328   :  { %v1408_v7 = vadd.f32 %v1407_v3, %v1406_v14 }
 0x32a   :  { %v1409_v17 = vrot.slane %v1408_v7, 2  ;;  %1609 = vperm.xlu1 %2028, %v2696_v2  }
 0x32b   :  { %1760 = vperm.xlu0 %2030, %v2696_v2  }
 0x32c   :  { %v1410_v53 = vadd.f32 %v1409_v17, %v1408_v7 }
 0x32e   :  { %v1411_v36 = vrot.slane %v1410_v53, 1  ;;  %2031 = vset.pattern.permute.xlu1 %v2127_v11 }
 0x32f   :  { %1752 = vperm.xlu1 %2031, %v2675_v43  }
 0x330   :  { %v1412_v56 = vadd.f32 %v1411_v36, %v1410_v53  ;;  %v1493_v53 = vpop.permute.xlu0 %1492 }
 0x332   :  { %v1414_v57 = vmul.f32 0.03125, %v1412_v56 }
 0x333   :  { %1756 = vperm.xlu1 %2031, %v2703_v6  }
 0x334   :  { %v1417_v18 = vsub.f32 %v1402_v58, %v1414_v57  ;;  %v1418_v60 = vsub.f32 %v1403_v51, %v1414_v57  ;;  %v1415_v52 = vsub.f32 %v1400_v47, %v1414_v57  ;;  %v1416_v38 = vsub.f32 %v1401_v28, %v1414_v57  ;;  %v1485_v51 = vpop.permute.xlu1 %1484 }
 0x335   :  { %v2128_v58 = vmov 6  }
 0x336   :  { %v1419_v29 = vmul.f32 %v1415_v52, %v1415_v52  ;;  %v1420_v24 = vmul.f32 %v1416_v38, %v1416_v38  ;;  %v1421_v35 = vmul.f32 %v1417_v18, %v1417_v18  ;;  %v1422_v32 = vmul.f32 %v1418_v60, %v1418_v60  ;;  %2033 = vset.pattern.permute.xlu0 %v2128_v58 }
 0x337   :  { %1772 = vperm.xlu0 %2033, %v2675_v43   ;;  %2032 = vset.pattern.permute.xlu1 %v2128_v58 }
 0x338   :  { %v1423_v42 = vadd.f32 %v1420_v24, %v1419_v29  ;;  %1768 = vperm.xlu1 %2032, %v2680_v50   ;;  %v1489_v43 = vpop.permute.xlu1 %1488  ;;  %v1839_v29 = vld [vmem:[%s3066_s3 + $0x50] sm:$0xff]  ;;  %v1840_v24 = vld [vmem:[%s3066_s3 + $0x58] sm:$0xff] }
 0x33a   :  { %v1424_v4 = vadd.f32 %v1423_v42, %v1421_v35 }
 0x33c   :  { %v1425_v8 = vadd.f32 %v1424_v4, %v1422_v32  ;;  %1776 = vperm.xlu1 %2032, %v2703_v6   ;;  %v1838_v6 = vld [vmem:[%s3066_s3 + $0x48] sm:$0xff] }
 0x33e   :  { %v1426_v30 = vrot.slane %v1425_v8, 4 }
 0x340   :  { %v1427_v21 = vadd.f32 %v1426_v30, %v1425_v8  ;;  %1780 = vperm.xlu1 %2032, %v2696_v2  }
 0x342   :  { %v1428_v40 = vrot.slane %v1427_v21, 2 }
 0x344   :  { %v1429_v31 = vadd.f32 %v1428_v40, %v1427_v21 }
 0x346   :  { %v1430_v33 = vrot.slane %v1429_v31, 1 }
 0x348   :  { %v1431_v45 = vadd.f32 %v1430_v33, %v1429_v31 }
 0x34a   :  { %v1432_v15 = vmul.f32 0.03125, %v1431_v45 }
 0x34c   :  { %v1433_v19 = vadd.f32 1e-05, %v1432_v15 }
 0x34e   :  { %2052 = vrsqrt.f32 %v1433_v19 }
 0x358   :  { %v2053_v44 = vpop.eup %2052 }
 0x359   :  { %v1436_v25 = vmul.f32 %v2053_v44, %v1416_v38  ;;  %v1437_v34 = vmul.f32 %v2053_v44, %v1417_v18  ;;  %v1435_v39 = vmul.f32 %v2053_v44, %v1415_v52  ;;  %v1438_v10 = vmul.f32 %v2053_v44, %v1418_v60 }
 0x35b   :  { %v1456_v37 = vmul.f32 %v1445_v16, %v1436_v25  ;;  %v1457_v41 = vmul.f32 %v1449_v20, %v1437_v34  ;;  %v1455_v46 = vmul.f32 %v1441_v5, %v1435_v39  ;;  %v1458_v61 = vmul.f32 %v1453_v13, %v1438_v10 }
 0x35d   :  { %v2983_v48 = vadd.f32 %v1461_v27, %v1455_v46  ;;  %v2985_v28 = vadd.f32 %v1465_v12, %v1456_v37  ;;  %v2987_v23 = vadd.f32 %v1473_v22, %v1458_v61  ;;  %v2989_v49 = vadd.f32 %v1469_v26, %v1457_v41 }
 0x35f   :  { %v1977_v47 = vpack.c.bf16 %v2985_v28, %v2983_v48  ;;  %v1981_v59 = vpack.c.bf16 %v2987_v23, %v2989_v49 }
 0x361   :  { %1978 = vmatprep.subr.bf16.mxu1 %v1977_v47 }
 0x362   :  { %1980 = vmatpush3.bf16.msra.mxu1 %v1977_v47 }
 0x363   :  { %1982 = vmatprep.subr.bf16.mxu1 %v1981_v59 }
 0x366   :  { %1984 = vmatpush3.bf16.msra.mxu1 %v1981_v59 }
 0x369   :  { %1942 = vmatmul.mubr.msk.f32.vlgmr.msra.gmra.mrb[4].mxu1 %vm116_vm0, %v1834_v0 }
 0x36a   :  { %1944 = vmatprep.mubr.msk.f32.mxu1 %vm116_vm0, %v1835_v1 }
 0x36d   :  { %1945 = vmatmul.mubr.msk.f32.gmra.mrb[6].mxu1 %vm116_vm0, %v1836_v54 }
 0x36e   :  { %1955 = vmatprep.mubr.msk.f32.mxu1 %vm116_vm0, %v1837_v63 }
 0x43c   :  { %v1943_v9 = vpop.f32.mrb[4].mxu1 }
 0x43d   :  { %v1579_v14 = vadd.f32 %v1943_v9, %v1485_v51  ;;  %v1573_v3 = vpop.f32.mrb[5].mxu1 }
 0x43e   :  { %v1574_v7 = vadd.f32 %v1573_v3, %v1481_v62 }
 0x43f   :  { %v1593_v17 = vmax.f32 %v1579_v14, 0.0 }
 0x440   :  { %v1592_v36 = vmax.f32 %v1574_v7, 0.0  ;;  %v1946_v56 = vpop.f32.mrb[6].mxu1 }
 0x441   :  { %v1589_v57 = vadd.f32 %v1946_v56, %v1493_v53  ;;  %v1583_v18 = vpop.f32.mrb[7].mxu1 }
 0x442   :  { %v1985_v60 = vpack.c.bf16 %v1593_v17, %v1592_v36  ;;  %v1584_v52 = vadd.f32 %v1583_v18, %v1489_v43 }
 0x443   :  { %v1595_v50 = vmax.f32 %v1589_v57, 0.0 }
 0x444   :  { %v1594_v38 = vmax.f32 %v1584_v52, 0.0  ;;  %1986 = vmatprep.subr.bf16.mxu1 %v1985_v60 }
 0x445   :  { %1988 = vmatpush3.bf16.msra.mxu1 %v1985_v60 }
 0x446   :  { %v1989_v2 = vpack.c.bf16 %v1595_v50, %v1594_v38 }
 0x448   :  { %1990 = vmatprep.subr.bf16.mxu1 %v1989_v2 }
 0x449   :  { %1992 = vmatpush3.bf16.msra.mxu1 %v1989_v2 }
 0x44c   :  { %1956 = vmatmul.mubr.msk.f32.vlgmr.msra.gmra.mrb[8].mxu1 %vm116_vm0, %v1838_v6 }
 0x44d   :  { %1958 = vmatprep.mubr.msk.f32.mxu1 %vm116_vm0, %v1839_v29 }
 0x450   :  { %1959 = vmatmul.mubr.msk.f32.gmra.mrb[10].mxu1 %vm116_vm0, %v1840_v24 }
 0x451   :  { %2071 = shalt.err (!%p2068_p4)
}
 0x452   :  { %s2072_s7 = scalar_lea.hbm %s3069_s6, 128 }
 0x453   :  { %p2073_p5 = scmp.ne.s32.totalorder %s3069_s6, %s2072_s7  ;;  %p2076_p6 = scmp.lt.u32.totalorder %s2072_s7, %s3069_s6 }
 0x455   :  { %p2078_p7 = pnand %p2076_p6, %p2073_p5 }
 0x457   :  { %2081 = shalt.err (!%p2078_p7)
}
 0x458   :  { %1812 = dma.vmem_to_hbm [thread:$0]  %s1810_s1, 128, %s3069_s6, [#allocation5]   ;;  %v1598_v35 = vpop.permute.xlu1 %1597  ;;  %v1602_v42 = vpop.permute.xlu0 %1601 }
 0x459   :  { %s2130_s6 = smov [#allocation2]  }
 0x45a   :  { %s1796_s13 = sshll.u32 %s2130_s6, 4  ;;  %s1797_s13 = int_to_ptr.vmem [resolvable:$true] %s1796_s13 }
 0x45b   :  { %s2082_s14 = scalar_lea.vmem %s1797_s13, 512  ;;  %p2087_p9 = scmp.lt.s32.totalorder %s1797_s13, %s1797_s13 }
 0x45c   :  { %v1606_v32 = vpop.permute.xlu1 %1605  ;;  %v1749_v7 = vpop.permute.xlu0 %1748  ;;  %p2083_p8 = scmp.ne.s32.totalorder %s1797_s13, %s2082_s14  ;;  %p2088_p10 = scmp.lt.s32.totalorder %s2082_s14, %s2082_s14 }
 0x45e   :  { %p2089_p11 = por %p2088_p10, %p2087_p9 }
 0x460   :  { %v1610_v33 = vpop.permute.xlu1 %1609  ;;  %v1761_v53 = vpop.permute.xlu0 %1760  ;;  %p2090_p12 = pnand %p2089_p11, %p2083_p8 }
 0x464   :  { %v1753_v55 = vpop.permute.xlu1 %1752  ;;  %v1773_v60 = vpop.permute.xlu0 %1772 }
 0x468   :  { %v1757_v9 = vpop.permute.xlu1 %1756 }
 0x46c   :  { %v1769_v3 = vpop.permute.xlu1 %1768 }
 0x470   :  { %v1777_v17 = vpop.permute.xlu1 %1776 }
 0x474   :  { %v1781_v6 = vpop.permute.xlu1 %1780 }
 0x51f   :  { %v1957_v4 = vpop.f32.mrb[8].mxu1 }
 0x520   :  { %v1696_v8 = vadd.f32 %v1957_v4, %v1602_v42  ;;  %v1690_v30 = vpop.f32.mrb[9].mxu1 }
 0x521   :  { %v1691_v21 = vadd.f32 %v1690_v30, %v1598_v35 }
 0x522   :  { %v1710_v16 = vadd.f32 %v1696_v8, %v2985_v28 }
 0x523   :  { %v1709_v40 = vadd.f32 %v1691_v21, %v2983_v48  ;;  %v1960_v31 = vpop.f32.mrb[10].mxu1 }
 0x524   :  { %v1700_v45 = vpop.f32.mrb[11].mxu1  ;;  %v1706_v15 = vadd.f32 %v1960_v31, %v1610_v33 }
 0x525   :  { %v1713_v27 = vadd.f32 %v1710_v16, %v1709_v40  ;;  %v1701_v19 = vadd.f32 %v1700_v45, %v1606_v32 }
 0x526   :  { %v1712_v5 = vadd.f32 %v1706_v15, %v2987_v23 }
 0x527   :  { %v1711_v20 = vadd.f32 %v1701_v19, %v2989_v49 }
 0x529   :  { %v1714_v13 = vadd.f32 %v1713_v27, %v1711_v20 }
 0x52b   :  { %v1715_v12 = vadd.f32 %v1714_v13, %v1712_v5 }
 0x52d   :  { %v1716_v44 = vrot.slane %v1715_v12, 4 }
 0x52f   :  { %v1717_v25 = vadd.f32 %v1716_v44, %v1715_v12 }
 0x531   :  { %v1718_v34 = vrot.slane %v1717_v25, 2 }
 0x533   :  { %v1719_v39 = vadd.f32 %v1718_v34, %v1717_v25 }
 0x535   :  { %v1720_v10 = vrot.slane %v1719_v39, 1 }
 0x537   :  { %v1721_v22 = vadd.f32 %v1720_v10, %v1719_v39 }
 0x539   :  { %v1722_v26 = vmul.f32 0.03125, %v1721_v22 }
 0x53b   :  { %v1725_v37 = vsub.f32 %v1711_v20, %v1722_v26  ;;  %v1726_v41 = vsub.f32 %v1712_v5, %v1722_v26  ;;  %v1723_v46 = vsub.f32 %v1709_v40, %v1722_v26  ;;  %v1724_v61 = vsub.f32 %v1710_v16, %v1722_v26 }
 0x53d   :  { %v1727_v48 = vmul.f32 %v1723_v46, %v1723_v46  ;;  %v1728_v28 = vmul.f32 %v1724_v61, %v1724_v61  ;;  %v1729_v47 = vmul.f32 %v1725_v37, %v1725_v37  ;;  %v1730_v49 = vmul.f32 %v1726_v41, %v1726_v41 }
 0x53f   :  { %v1731_v59 = vadd.f32 %v1728_v28, %v1727_v48 }
 0x541   :  { %v1732_v0 = vadd.f32 %v1731_v59, %v1729_v47 }
 0x543   :  { %v1733_v23 = vadd.f32 %v1732_v0, %v1730_v49 }
 0x545   :  { %v1734_v1 = vrot.slane %v1733_v23, 4 }
 0x547   :  { %v1735_v54 = vadd.f32 %v1734_v1, %v1733_v23 }
 0x549   :  { %v1736_v63 = vrot.slane %v1735_v54, 2 }
 0x54b   :  { %v1737_v11 = vadd.f32 %v1736_v63, %v1735_v54 }
 0x54d   :  { %v1738_v58 = vrot.slane %v1737_v11, 1 }
 0x54f   :  { %v1739_v62 = vadd.f32 %v1738_v58, %v1737_v11 }
 0x551   :  { %v1740_v51 = vmul.f32 0.03125, %v1739_v62 }
 0x553   :  { %v1741_v14 = vadd.f32 1e-05, %v1740_v51 }
 0x555   :  { %2054 = vrsqrt.f32 %v1741_v14 }
 0x55f   :  { %v2055_v36 = vpop.eup %2054 }
 0x560   :  { %v1744_v56 = vmul.f32 %v2055_v36, %v1724_v61  ;;  %v1745_v43 = vmul.f32 %v2055_v36, %v1725_v37  ;;  %v1743_v57 = vmul.f32 %v2055_v36, %v1723_v46  ;;  %v1746_v18 = vmul.f32 %v2055_v36, %v1726_v41 }
 0x562   :  { %v1764_v52 = vmul.f32 %v1753_v55, %v1744_v56  ;;  %v1765_v50 = vmul.f32 %v1757_v9, %v1745_v43  ;;  %v1763_v38 = vmul.f32 %v1749_v7, %v1743_v57  ;;  %v1766_v2 = vmul.f32 %v1761_v53, %v1746_v18 }
 0x564   :  { %v1783_v29 = vadd.f32 %v1769_v3, %v1763_v38  ;;  %v1785_v24 = vadd.f32 %v1777_v17, %v1765_v50  ;;  %v1786_v35 = vadd.f32 %v1781_v6, %v1766_v2  ;;  %v1784_v42 = vadd.f32 %v1773_v60, %v1764_v52 }
 0x566   :  { %1787 = vst [vmem:[#allocation2] sm:$0xff] %v1783_v29  ;;  %1789 = vst [vmem:[#allocation2 + $0x10] sm:$0xff] %v1785_v24 }
 0x567   :  { %1790 = vst [vmem:[#allocation2 + $0x18] sm:$0xff] %v1786_v35  ;;  %1788 = vst [vmem:[#allocation2 + $0x8] sm:$0xff] %v1784_v42 }
 0x568   :  { %2093 = shalt.err (!%p2090_p12)
}
 0x569   :  { %s2094_s16 = scalar_lea.hbm %s3068_s5, 512 }
 0x56a   :  { %p2095_p13 = scmp.ne.s32.totalorder %s3068_s5, %s2094_s16  ;;  %p2098_p0 = scmp.lt.u32.totalorder %s2094_s16, %s3068_s5 }
 0x56c   :  { %p2100_p1 = pnand %p2098_p0, %p2095_p13 }
 0x56e   :  { %2103 = shalt.err (!%p2100_p1)
}
 0x56f   :  { %s2131_s21 = smov 128   ;;  %s2132_s22 = smov 8  }
 0x570   :  { %1802 = dma.vmem_to_hbm [thread:$0]  %s1797_s13, 512, %s3068_s5, [#allocation3], %s2131_s21, %s2131_s21, %s2132_s22  }
 0x571   :  { %2104 = dma.done.wait [#allocation3], 512  }
 0x572   :  { %2105 = vsyncadd [#allocation3], 4294966784 }
 0x573   :  { %2106 = dma.done.wait [#allocation5], 128  }
 0x574   :  { %2107 = vsyncadd [#allocation5], 4294967168 }
 0x575   :  { %1819 = vsyncpa [#allocation3], 1 }
 0x576   :  { %1820 = vsyncpa [#allocation5], 1 }

</bundles_post_ra>
